<compile_context>
chip_gen: v7x
topology: tpu7x:2x2x1
jax: 0.10.0
libtpu: 0.0.40
codegen_flags: <defaults>
</compile_context>

<pallas_src>
import functools

import jax
import jax.numpy as jnp
from jax.experimental import pallas as pl
from jax.experimental.pallas import tpu as pltpu

D_IN, D_H1, D_H2, D_OUT = 256, 512, 1024, 1


def _round_up(n, m):
    return ((n + m - 1) // m) * m


def _vmem_capacity_bytes():
    """Physical VMEM per TensorCore; conservative 64 MiB (v7x) fallback."""
    try:
        info = pltpu.get_tpu_info()
        cap = getattr(info, "vmem_capacity_bytes", None)
        if cap:
            return int(cap)
    except Exception:
        pass
    return 64 << 20


_VMEM_CAP = _vmem_capacity_bytes()
# Max batch tile: bigger tiles amortize the ~0.35us/grid-step overhead and keep
# the MXU streaming per weight push; capped lower on 64-MiB-VMEM parts (v7x).
_TB_MAX = 2048 if _VMEM_CAP >= (96 << 20) else 1024


def _pick_tb(batch):
    """Batch-tile: sublane aligned, >=2 grid steps when possible (v7x megacore),
    128-row aligned once the batch is big enough (MXU occupancy on v5e)."""
    half = -(-batch // 2)                       # cdiv(batch, 2)
    align = 128 if half >= 128 else 8
    return max(8, min(_TB_MAX, _round_up(half, align)))


def _vmem_limit_bytes(tb, w_itemsize):
    """Right-size the scoped-VMEM request from the actual footprint, leaving
    headroom below physical VMEM (never request all of a v7x TC's 64 MiB)."""
    weights = 2 * (D_IN * D_H1 + D_H1 * D_H2) * w_itemsize       # 2x buffered
    weights += 2 * (D_H1 + D_H2 + D_H2 + D_OUT) * 4              # b1,b2,w3,b3 f32
    x_bufs = 2 * tb * D_IN * 4
    out_bufs = 2 * tb * D_OUT * 4
    # In-kernel intermediates: x/h1 bf16 casts, h1/h2 f32, layer-3 product.
    interm = tb * (D_IN * 2 + D_H1 * (4 + 2) + D_H2 * (4 + 4))
    need = weights + x_bufs + out_bufs + interm
    return int(min(max(need + (16 << 20), 32 << 20), _VMEM_CAP - (16 << 20)))


def countsnet_kernel(x_ref, w1_ref, b1_ref, w2_ref, b2_ref, w3_ref, b3_ref,
                     o_ref):
    # wdt = MXU operand dtype (bf16 by default); accumulation is always f32.
    wdt = w1_ref.dtype

    # Linear1 + ReLU  (dropout1 is identity at inference)
    h1 = jnp.dot(x_ref[...].astype(wdt), w1_ref[...],
                 preferred_element_type=jnp.float32) + b1_ref[...]
    h1 = jnp.maximum(h1, 0.0)

    # Linear2 + ReLU  (dropout2 is identity at inference)
    h2 = jnp.dot(h1.astype(wdt), w2_ref[...],
                 preferred_element_type=jnp.float32) + b2_ref[...]
    h2 = jnp.maximum(h2, 0.0)

    # Linear3 + Sigmoid.  out_features == 1, so skip the MXU (an N=1 matmul
    # wastes 127/255 result lanes): f32 VPU multiply + lane reduction.  All
    # elementwise/reduction math stays f32 (v5e has no bf16 VPU/EUP); w3/b3
    # are kept f32 so there is no per-tile cast.
    logit = jnp.sum(h2 * w3_ref[...], axis=-1, keepdims=True) + b3_ref[...]
    o_ref[...] = jax.nn.sigmoid(logit)
    # TODO(synk): training-mode Dropout(0.25) (pltpu.prng_random_bits mask)
    # intentionally omitted -- forward here matches model.eval() semantics.
    # TODO(synk): evaluate fp8 weight storage on v7x (MXU supports bf16+fp8).


@functools.partial(jax.jit, static_argnames=("weight_dtype",))
def countsnet_forward(x, params, *, weight_dtype=jnp.bfloat16):
    """x: (B, 256) float32 -> (B, 1) float32.

    NOTE: weight_dtype is the MXU *operand* dtype -- both the stored weights
    (w1, w2) and the activations (x, h1) are cast to it in-kernel; accumulation
    stays f32.  The default bf16 trades ~1e-2 absolute output error for 2-4x
    MXU throughput; pass jnp.float32 for the exact path.
    """
    w1, b1, w2, b2, w3, b3 = params
    w1 = w1.astype(weight_dtype)
    w2 = w2.astype(weight_dtype)
    w3 = w3.reshape(1, D_H2).astype(jnp.float32)   # layer-3 VPU row, f32
    b3 = b3.reshape(1, D_OUT).astype(jnp.float32)

    B = x.shape[0]
    tb = _pick_tb(B)
    # No jnp.pad: Pallas pads/masks the ragged last block itself (rows are
    # independent; OOB output rows never reach HBM).
    grid = (pl.cdiv(B, tb),)

    # Weights/biases use constant index maps: DMA'd once, VMEM-resident across
    # all grid steps.  Their default 2-deep buffering (~1.3 MiB extra in bf16)
    # is accounted for in _vmem_limit_bytes.
    const = lambda i: (0, 0)
    in_specs = [
        pl.BlockSpec((tb, D_IN), lambda i: (i, 0)),   # x tile (pipelined)
        pl.BlockSpec((D_IN, D_H1), const),            # w1
        pl.BlockSpec((1, D_H1), const),               # b1
        pl.BlockSpec((D_H1, D_H2), const),            # w2
        pl.BlockSpec((1, D_H2), const),               # b2
        pl.BlockSpec((1, D_H2), const),               # w3 as a lane row (f32)
        pl.BlockSpec((1, D_OUT), const),              # b3
    ]
    out_specs = pl.BlockSpec((tb, D_OUT), lambda i: (i, 0))

    flops = 2 * B * (D_IN * D_H1 + D_H1 * D_H2 + D_H2 * D_OUT)
    bytes_accessed = (
        x.size * x.dtype.itemsize
        + sum(a.size * a.dtype.itemsize for a in (w1, b1, w2, b2, w3, b3))
        + B * D_OUT * 4
    )
    cost = pl.CostEstimate(flops=flops, transcendentals=B,
                           bytes_accessed=bytes_accessed)

    return pl.pallas_call(
        countsnet_kernel,
        out_shape=jax.ShapeDtypeStruct((B, D_OUT), jnp.float32),
        grid=grid,
        in_specs=in_specs,
        out_specs=out_specs,
        compiler_params=pltpu.CompilerParams(
            dimension_semantics=("parallel",),   # megacore sharding on v7x
            vmem_limit_bytes=_vmem_limit_bytes(
                tb, jnp.dtype(weight_dtype).itemsize),
        ),
        cost_estimate=cost,
    )(x, w1, b1, w2, b2, w3, b3)


def init_params(key):
    """Deterministic init mimicking nn.Linear defaults (uniform +-1/sqrt(fan_in))."""
    def linear(key, fan_in, fan_out):
        kw, kb = jax.random.split(key)
        bound = 1.0 / jnp.sqrt(fan_in)
        w = jax.random.uniform(kw, (fan_in, fan_out), jnp.float32,
                               -bound, bound)
        b = jax.random.uniform(kb, (1, fan_out), jnp.float32, -bound, bound)
        return w, b

    k1, k2, k3 = jax.random.split(key, 3)
    w1, b1 = linear(k1, D_IN, D_H1)
    w2, b2 = linear(k2, D_H1, D_H2)
    w3, b3 = linear(k3, D_H2, D_OUT)
    return (w1, b1, w2, b2, w3, b3)


def _reference(x, params):
    w1, b1, w2, b2, w3, b3 = params
    h = jnp.maximum(x @ w1 + b1, 0.0)
    h = jnp.maximum(h @ w2 + b2, 0.0)
    return jax.nn.sigmoid(h @ w3 + b3)


if __name__ == "__main__":
    key = jax.random.PRNGKey(0)
    kx, kx2, kx3, kp = jax.random.split(key, 4)
    params = init_params(kp)

    # 1) exact f32 path, small batch -- tight tolerance
    B = 8
    x = jax.random.normal(kx, (B, D_IN), dtype=jnp.float32)
    ref = _reference(x, params)
    out_f32 = jax.block_until_ready(
        countsnet_forward(x, params, weight_dtype=jnp.float32))
    assert out_f32.shape == (B, D_OUT)
    assert bool(jnp.allclose(out_f32, ref, atol=1e-5, rtol=1e-5)), "f32 mismatch"

    # 2) default bf16 MXU path -- looser tolerance (bf16 operands, f32 accum)
    out_bf16 = jax.block_until_ready(countsnet_forward(x, params))
    assert out_bf16.shape == (B, D_OUT)
    assert bool(jnp.all((out_bf16 >= 0.0) & (out_bf16 <= 1.0)))
    assert bool(jnp.allclose(out_bf16, ref, atol=3e-2, rtol=3e-2)), "bf16 drift"

    # 3) batch not a multiple of the tile -- ragged last block (no padding),
    #    2-step grid
    B2 = 20
    x2 = jax.random.normal(kx2, (B2, D_IN), dtype=jnp.float32)
    out2 = jax.block_until_ready(countsnet_forward(x2, params))
    assert out2.shape == (B2, D_OUT)
    ref2 = _reference(x2, params)
    assert bool(jnp.allclose(out2, ref2, atol=3e-2, rtol=3e-2)), "ragged mismatch"

    # 4) moderately larger batch -- exact 2-way tile split
    B3 = 192
    x3 = jax.random.normal(kx3, (B3, D_IN), dtype=jnp.float32)
    out3 = jax.block_until_ready(countsnet_forward(x3, params))
    assert out3.shape == (B3, D_OUT)
    ref3 = _reference(x3, params)
    assert bool(jnp.allclose(out3, ref3, atol=3e-2, rtol=3e-2)), "batch mismatch"

    print("KERNEL_OK")
</pallas_src>

<mosaic_0001>
module attributes {stable_mosaic.version = 11 : i64} {
  func.func @countsnet_kernel(%arg0: i32, %arg1: memref<8x256xf32, #tpu.memory_space<vmem>>, %arg2: memref<256x512xf32, #tpu.memory_space<vmem>>, %arg3: memref<1x512xf32, #tpu.memory_space<vmem>>, %arg4: memref<512x1024xf32, #tpu.memory_space<vmem>>, %arg5: memref<1x1024xf32, #tpu.memory_space<vmem>>, %arg6: memref<1x1024xf32, #tpu.memory_space<vmem>>, %arg7: memref<1x1xf32, #tpu.memory_space<vmem>>, %arg8: memref<8x1xf32, #tpu.memory_space<vmem>>) attributes {dimension_semantics = [#tpu.dimension_semantics<parallel>], iteration_bounds = array<i64: 1>, scalar_prefetch = 0 : i64, scratch_operands = 0 : i64, tpu.core_type = #tpu.core_type<tc>, window_params = [{transform_indices = @transform_0, window_bounds = array<i64: 8, 256>}, {pipeline_mode = #tpu.pipeline_mode<synchronous>, transform_indices = @transform_1, window_bounds = array<i64: 256, 512>}, {pipeline_mode = #tpu.pipeline_mode<synchronous>, transform_indices = @transform_2, window_bounds = array<i64: 1, 512>}, {pipeline_mode = #tpu.pipeline_mode<synchronous>, transform_indices = @transform_3, window_bounds = array<i64: 512, 1024>}, {pipeline_mode = #tpu.pipeline_mode<synchronous>, transform_indices = @transform_4, window_bounds = array<i64: 1, 1024>}, {pipeline_mode = #tpu.pipeline_mode<synchronous>, transform_indices = @transform_5, window_bounds = array<i64: 1, 1024>}, {pipeline_mode = #tpu.pipeline_mode<synchronous>, transform_indices = @transform_6, window_bounds = array<i64: 1, 1>}, {transform_indices = @transform_7, window_bounds = array<i64: 8, 1>}]} {
    %c0 = arith.constant 0 : index
    %c0_0 = arith.constant 0 : index
    %0 = vector.load %arg1[%c0, %c0_0] : memref<8x256xf32, #tpu.memory_space<vmem>>, vector<8x256xf32>
    %c0_1 = arith.constant 0 : index
    %c0_2 = arith.constant 0 : index
    %1 = vector.load %arg2[%c0_1, %c0_2] : memref<256x512xf32, #tpu.memory_space<vmem>>, vector<256x512xf32>
    %cst = arith.constant dense<0.000000e+00> : vector<8x512xf32>
    %2 = tpu.matmul %0, %1, %cst {dimension_numbers = #tpu.dot_dimension_numbers<[1], [0], [0], [1], [0, 0, 1, 1], [], []>} : vector<8x256xf32>, vector<256x512xf32>, vector<8x512xf32> -> vector<8x512xf32>
    %c0_3 = arith.constant 0 : index
    %c0_4 = arith.constant 0 : index
    %3 = vector.load %arg3[%c0_3, %c0_4] : memref<1x512xf32, #tpu.memory_space<vmem>>, vector<1x512xf32>
    %4 = vector.broadcast %3 : vector<1x512xf32> to vector<8x512xf32>
    %5 = arith.addf %2, %4 : vector<8x512xf32>
    %cst_5 = arith.constant 0.000000e+00 : f32
    %6 = vector.broadcast %cst_5 : f32 to vector<8x512xf32>
    %7 = arith.maximumf %5, %6 : vector<8x512xf32>
    %c0_6 = arith.constant 0 : index
    %c0_7 = arith.constant 0 : index
    %8 = vector.load %arg4[%c0_6, %c0_7] : memref<512x1024xf32, #tpu.memory_space<vmem>>, vector<512x1024xf32>
    %cst_8 = arith.constant dense<0.000000e+00> : vector<8x1024xf32>
    %9 = tpu.matmul %7, %8, %cst_8 {dimension_numbers = #tpu.dot_dimension_numbers<[1], [0], [0], [1], [0, 0, 1, 1], [], []>} : vector<8x512xf32>, vector<512x1024xf32>, vector<8x1024xf32> -> vector<8x1024xf32>
    %c0_9 = arith.constant 0 : index
    %c0_10 = arith.constant 0 : index
    %10 = vector.load %arg5[%c0_9, %c0_10] : memref<1x1024xf32, #tpu.memory_space<vmem>>, vector<1x1024xf32>
    %11 = vector.broadcast %10 : vector<1x1024xf32> to vector<8x1024xf32>
    %12 = arith.addf %9, %11 : vector<8x1024xf32>
    %cst_11 = arith.constant 0.000000e+00 : f32
    %13 = vector.broadcast %cst_11 : f32 to vector<8x1024xf32>
    %14 = arith.maximumf %12, %13 : vector<8x1024xf32>
    %c0_12 = arith.constant 0 : index
    %c0_13 = arith.constant 0 : index
    %15 = vector.load %arg6[%c0_12, %c0_13] : memref<1x1024xf32, #tpu.memory_space<vmem>>, vector<1x1024xf32>
    %16 = vector.broadcast %15 : vector<1x1024xf32> to vector<8x1024xf32>
    %17 = arith.mulf %14, %16 : vector<8x1024xf32>
    %cst_14 = arith.constant dense<0.000000e+00> : vector<8xf32>
    %18 = vector.multi_reduction <add>, %17, %cst_14 [1] : vector<8x1024xf32> to vector<8xf32>
    %19 = vector.shape_cast %18 : vector<8xf32> to vector<8x1xf32>
    %c0_15 = arith.constant 0 : index
    %c0_16 = arith.constant 0 : index
    %20 = vector.load %arg7[%c0_15, %c0_16] : memref<1x1xf32, #tpu.memory_space<vmem>>, vector<1x1xf32>
    %21 = vector.broadcast %20 : vector<1x1xf32> to vector<8x1xf32>
    %22 = arith.addf %19, %21 : vector<8x1xf32>
    %23 = arith.negf %22 : vector<8x1xf32>
    %24 = math.exp %23 : vector<8x1xf32>
    %cst_17 = arith.constant 1.000000e+00 : f32
    %25 = vector.broadcast %cst_17 : f32 to vector<8x1xf32>
    %26 = arith.addf %25, %24 : vector<8x1xf32>
    %27 = arith.divf %25, %26 : vector<8x1xf32>
    %c0_18 = arith.constant 0 : index
    %c0_19 = arith.constant 0 : index
    %28 = vector.load %arg8[%c0_18, %c0_19] : memref<8x1xf32, #tpu.memory_space<vmem>>, vector<8x1xf32>
    tpu.vector_store %arg8[%c0_18, %c0_19], %27 {strides = array<i32>} : memref<8x1xf32, #tpu.memory_space<vmem>>, vector<8x1xf32>,
    return
  }
  func.func @transform_0(%arg0: i32) -> (i32, i32) {
    %c0_i32 = arith.constant 0 : i32
    %c0_i32_0 = arith.constant 0 : i32
    return %arg0, %c0_i32 : i32, i32
  }
  func.func @transform_1(%arg0: i32) -> (i32, i32) {
    %c0_i32 = arith.constant 0 : i32
    %c0_i32_0 = arith.constant 0 : i32
    %c0_i32_1 = arith.constant 0 : i32
    return %c0_i32, %c0_i32_0 : i32, i32
  }
  func.func @transform_2(%arg0: i32) -> (i32, i32) {
    %c0_i32 = arith.constant 0 : i32
    %c0_i32_0 = arith.constant 0 : i32
    %c0_i32_1 = arith.constant 0 : i32
    return %c0_i32, %c0_i32_0 : i32, i32
  }
  func.func @transform_3(%arg0: i32) -> (i32, i32) {
    %c0_i32 = arith.constant 0 : i32
    %c0_i32_0 = arith.constant 0 : i32
    %c0_i32_1 = arith.constant 0 : i32
    return %c0_i32, %c0_i32_0 : i32, i32
  }
  func.func @transform_4(%arg0: i32) -> (i32, i32) {
    %c0_i32 = arith.constant 0 : i32
    %c0_i32_0 = arith.constant 0 : i32
    %c0_i32_1 = arith.constant 0 : i32
    return %c0_i32, %c0_i32_0 : i32, i32
  }
  func.func @transform_5(%arg0: i32) -> (i32, i32) {
    %c0_i32 = arith.constant 0 : i32
    %c0_i32_0 = arith.constant 0 : i32
    %c0_i32_1 = arith.constant 0 : i32
    return %c0_i32, %c0_i32_0 : i32, i32
  }
  func.func @transform_6(%arg0: i32) -> (i32, i32) {
    %c0_i32 = arith.constant 0 : i32
    %c0_i32_0 = arith.constant 0 : i32
    %c0_i32_1 = arith.constant 0 : i32
    return %c0_i32, %c0_i32_0 : i32, i32
  }
  func.func @transform_7(%arg0: i32) -> (i32, i32) {
    %c0_i32 = arith.constant 0 : i32
    %c0_i32_0 = arith.constant 0 : i32
    return %arg0, %c0_i32 : i32, i32
  }
}

</mosaic_0001>

<bundles_post_ra>
// kernel: countsnet_forward.1
= control target key start
LH: loop header
LB: loop body
LE: loop exit
PB: predicated region body
PF: predicated region fallthrough
CT: control target
= control target key end

     0   :  { %s2620_s0 = inlined_call_operand.hbm [shape: f32[8,256], index: 0, kind: input, shape index: {}]   ;;  %s2621_s1 = inlined_call_operand.hbm [shape: f32[256,512], index: 1, kind: input, shape index: {}]   ;;  %s2622_s2 = inlined_call_operand.hbm [shape: f32[1,512], index: 2, kind: input, shape index: {}]   ;;  %s2623_s3 = inlined_call_operand.hbm [shape: f32[512,1024], index: 3, kind: input, shape index: {}]   ;;  %s2624_s4 = inlined_call_operand.hbm [shape: f32[1,1024], index: 4, kind: input, shape index: {}]   ;;  %s2625_s5 = inlined_call_operand.hbm [shape: f32[1,1024], index: 5, kind: input, shape index: {}]   ;;  %s2626_s6 = inlined_call_operand.<no memory space> [shape: f32[1,1], index: 6, kind: input, shape index: {}]   ;;  %s2627_s7 = inlined_call_operand.vmem [shape: f32[8,1], index: 7, kind: output, shape index: {}]  }
   0x1   :  { %v12_v0 = vstv %s2626_s6 }
   0x2   :  { %13 = vst [vmem:[#allocation2] sm:$0x1] %v12_v0 }
   0x3   :  { %14 = vsyncpa [#allocation4], 0 }
   0x4   :  { %15 = vsyncpa [#allocation6], 0 }
   0x5   :  { %16 = vsyncpa [#allocation9], 0 }
   0x6   :  { %17 = vsyncpa [#allocation12], 0  ;;  %s2425_s26 = smov [#allocation5]   ;;  %s2285_s30 = scalar_lea.hbm %s2621_s1, 16384 }
   0x7   :  { %s33_s27 = sshll.u32 %s2425_s26, 4  ;;  %p2286_p0 = scmp.ne.s32.totalorder %s2621_s1, %s2285_s30  ;;  %s34_s27 = int_to_ptr.vmem [resolvable:$true] %s33_s27 }
   0x8   :  { %p2289_p1 = scmp.lt.u32.totalorder %s2285_s30, %s2621_s1 }
   0xa   :  { %p2291_p2 = pnand %p2289_p1, %p2286_p0 }
   0xc   :  { %2294 = shalt.err (!%p2291_p2)
}
   0xd   :  { %s2295_s6 = scalar_lea.vmem %s34_s27, 16384  ;;  %p2300_p4 = scmp.lt.s32.totalorder %s34_s27, %s34_s27 }
   0xe   :  { %p2296_p3 = scmp.ne.s32.totalorder %s34_s27, %s2295_s6  ;;  %p2301_p5 = scmp.lt.s32.totalorder %s2295_s6, %s2295_s6 }
  0x10   :  { %p2302_p6 = por %p2301_p5, %p2300_p4 }
  0x12   :  { %p2303_p7 = pnand %p2302_p6, %p2296_p3 }
  0x14   :  { %2306 = shalt.err (!%p2303_p7)
}
  0x15   :  { %s2426_s12 = smov 512   ;;  %s2427_s13 = smov 32  }
  0x16   :  { %39 = dma.hbm_to_vmem [thread:$0]  %s2621_s1, 16384, %s34_s27, [#allocation6], %s2426_s12, %s2426_s12, %s2427_s13  }
  0x17   :  { %s2428_s16 = smov [#allocation8]   ;;  %s2307_s20 = scalar_lea.hbm %s2623_s3, 65536 }
  0x18   :  { %s55_s17 = sshll.u32 %s2428_s16, 4  ;;  %p2308_p8 = scmp.ne.s32.totalorder %s2623_s3, %s2307_s20  ;;  %s56_s17 = int_to_ptr.vmem [resolvable:$true] %s55_s17 }
  0x19   :  { %p2311_p9 = scmp.lt.u32.totalorder %s2307_s20, %s2623_s3 }
  0x1b   :  { %p2313_p10 = pnand %p2311_p9, %p2308_p8 }
  0x1d   :  { %2316 = shalt.err (!%p2313_p10)
}
  0x1e   :  { %s2317_s25 = scalar_lea.vmem %s56_s17, 65536  ;;  %p2322_p12 = scmp.lt.s32.totalorder %s56_s17, %s56_s17 }
  0x1f   :  { %p2318_p11 = scmp.ne.s32.totalorder %s56_s17, %s2317_s25  ;;  %p2323_p13 = scmp.lt.s32.totalorder %s2317_s25, %s2317_s25 }
  0x21   :  { %p2324_p0 = por %p2323_p13, %p2322_p12 }
  0x23   :  { %p2325_p1 = pnand %p2324_p0, %p2318_p11 }
  0x25   :  { %2328 = shalt.err (!%p2325_p1)
}
  0x26   :  { %s2429_s1 = smov 1024   ;;  %s2430_s26 = smov 64  }
  0x27   :  { %61 = dma.hbm_to_vmem [thread:$0]  %s2623_s3, 65536, %s56_s17, [#allocation9], %s2429_s1, %s2429_s1, %s2430_s26  }
  0x28   :  { %s2431_s29 = smov [#allocation3]   ;;  %s2432_s8 = smov [#allocation7]  }
  0x29   :  { %s24_s30 = sshll.u32 %s2431_s29, 4  ;;  %s46_s9 = sshll.u32 %s2432_s8, 4  ;;  %s25_s30 = int_to_ptr.vmem [resolvable:$true] %s24_s30  ;;  %s47_s9 = int_to_ptr.vmem [resolvable:$true] %s46_s9 }
  0x2a   :  { %s2329_s6 = scalar_lea.hbm %s2620_s0, 256 }
  0x2b   :  { %p2330_p2 = scmp.ne.s32.totalorder %s2620_s0, %s2329_s6  ;;  %p2333_p3 = scmp.lt.u32.totalorder %s2329_s6, %s2620_s0 }
  0x2d   :  { %p2335_p4 = pnand %p2333_p3, %p2330_p2 }
  0x2f   :  { %2338 = shalt.err (!%p2335_p4)
}
  0x30   :  { %s2339_s3 = scalar_lea.vmem %s25_s30, 256  ;;  %p2344_p6 = scmp.lt.s32.totalorder %s25_s30, %s25_s30 }
  0x31   :  { %p2340_p5 = scmp.ne.s32.totalorder %s25_s30, %s2339_s3  ;;  %p2345_p7 = scmp.lt.s32.totalorder %s2339_s3, %s2339_s3 }
  0x33   :  { %p2346_p8 = por %p2345_p7, %p2344_p6 }
  0x35   :  { %p2347_p9 = pnand %p2346_p8, %p2340_p5 }
  0x37   :  { %2350 = shalt.err (!%p2347_p9)
}
  0x38   :  { %27 = dma.hbm_to_vmem [thread:$0]  %s2620_s0, 256, %s25_s30, [#allocation4]  }
  0x39   :  { %s2351_s20 = scalar_lea.hbm %s2622_s2, 64 }
  0x3a   :  { %p2352_p10 = scmp.ne.s32.totalorder %s2622_s2, %s2351_s20  ;;  %p2355_p11 = scmp.lt.u32.totalorder %s2351_s20, %s2622_s2 }
  0x3c   :  { %p2357_p12 = pnand %p2355_p11, %p2352_p10 }
  0x3e   :  { %2360 = shalt.err (!%p2357_p12)
}
  0x3f   :  { %s2361_s25 = scalar_lea.vmem %s47_s9, 64  ;;  %p2366_p0 = scmp.lt.s32.totalorder %s47_s9, %s47_s9 }
  0x40   :  { %p2362_p13 = scmp.ne.s32.totalorder %s47_s9, %s2361_s25  ;;  %p2367_p1 = scmp.lt.s32.totalorder %s2361_s25, %s2361_s25 }
  0x42   :  { %p2368_p2 = por %p2367_p1, %p2366_p0 }
  0x44   :  { %p2369_p3 = pnand %p2368_p2, %p2362_p13 }
  0x46   :  { %2372 = shalt.err (!%p2369_p3)
}
  0x47   :  { %49 = dma.hbm_to_vmem [thread:$0]  %s2622_s2, 64, %s47_s9, [#allocation6]  }
  0x48   :  { %s2433_s26 = smov [#allocation10]   ;;  %s2434_s28 = smov [#allocation11]  }
  0x49   :  { %s68_s27 = sshll.u32 %s2433_s26, 4  ;;  %s78_s29 = sshll.u32 %s2434_s28, 4  ;;  %s69_s27 = int_to_ptr.vmem [resolvable:$true] %s68_s27  ;;  %s79_s29 = int_to_ptr.vmem [resolvable:$true] %s78_s29 }
  0x4a   :  { %s2373_s10 = scalar_lea.hbm %s2624_s4, 128 }
  0x4b   :  { %p2374_p4 = scmp.ne.s32.totalorder %s2624_s4, %s2373_s10  ;;  %p2377_p5 = scmp.lt.u32.totalorder %s2373_s10, %s2624_s4 }
  0x4d   :  { %p2379_p6 = pnand %p2377_p5, %p2374_p4 }
  0x4f   :  { %2382 = shalt.err (!%p2379_p6)
}
  0x50   :  { %s2383_s2 = scalar_lea.vmem %s69_s27, 128  ;;  %p2388_p8 = scmp.lt.s32.totalorder %s69_s27, %s69_s27 }
  0x51   :  { %p2384_p7 = scmp.ne.s32.totalorder %s69_s27, %s2383_s2  ;;  %p2389_p9 = scmp.lt.s32.totalorder %s2383_s2, %s2383_s2 }
  0x53   :  { %p2390_p10 = por %p2389_p9, %p2388_p8 }
  0x55   :  { %p2391_p11 = pnand %p2390_p10, %p2384_p7 }
  0x57   :  { %2394 = shalt.err (!%p2391_p11)
}
  0x58   :  { %71 = dma.hbm_to_vmem [thread:$0]  %s2624_s4, 128, %s69_s27, [#allocation9]  }
  0x59   :  { %s2395_s16 = scalar_lea.hbm %s2625_s5, 128 }
  0x5a   :  { %p2396_p12 = scmp.ne.s32.totalorder %s2625_s5, %s2395_s16  ;;  %p2399_p13 = scmp.lt.u32.totalorder %s2395_s16, %s2625_s5 }
  0x5c   :  { %p2401_p0 = pnand %p2399_p13, %p2396_p12 }
  0x5e   :  { %2404 = shalt.err (!%p2401_p0)
}
  0x5f   :  { %s2405_s21 = scalar_lea.vmem %s79_s29, 128  ;;  %p2410_p2 = scmp.lt.s32.totalorder %s79_s29, %s79_s29 }
  0x60   :  { %p2406_p1 = scmp.ne.s32.totalorder %s79_s29, %s2405_s21  ;;  %p2411_p3 = scmp.lt.s32.totalorder %s2405_s21, %s2405_s21 }
  0x62   :  { %p2412_p4 = por %p2411_p3, %p2410_p2 }
  0x64   :  { %p2413_p5 = pnand %p2412_p4, %p2406_p1 }
  0x66   :  { %2416 = shalt.err (!%p2413_p5)
}
  0x67   :  { %81 = dma.hbm_to_vmem [thread:$0]  %s2625_s5, 128, %s79_s29, [#allocation12]  }
  0x68   :  { %2417 = dma.done.wait [#allocation4], 256  }
  0x69   :  { %2418 = vsyncadd [#allocation4], 4294967040 }
  0x6a   :  { %2419 = dma.done.wait [#allocation6], 16448  }
  0x6b   :  { %2420 = vsyncadd [#allocation6], 4294950848 }
  0x6c   :  { %2421 = dma.done.wait [#allocation9], 65664  }
  0x6d   :  { %2422 = vsyncadd [#allocation9], 4294901632 }
  0x6e   :  { %2423 = dma.done.wait [#allocation12], 128  }
  0x6f   :  { %2424 = vsyncadd [#allocation12], 4294967168  ;;  %v105_v1 = vld [vmem:[#allocation5 + $0x8] sm:$0xff]  ;;  %v104_v3 = vld [vmem:[#allocation5] sm:$0xff]  ;;  %vm1603_vm0 = vcmask 7168  }
  0x70   :  { %v109_v2 = vld [vmem:[#allocation5 + $0x28] sm:$0xff]  ;;  %v108_v5 = vld [vmem:[#allocation5 + $0x20] sm:$0xff]  ;;  %v103_v43 = vld [vmem:[#allocation3 + $0x8] sm:$0xff] }
  0x71   :  { %v1615_v4 = vpack.c.bf16 %v109_v2, %v105_v1  ;;  %v113_v6 = vld [vmem:[#allocation5 + $0x48] sm:$0xff]  ;;  %v1617_v8 = vpack.c.bf16 %v108_v5, %v104_v3  ;;  %v112_v10 = vld [vmem:[#allocation5 + $0x40] sm:$0xff]  ;;  %v107_v44 = vld [vmem:[#allocation5 + $0x18] sm:$0xff]  ;;  %318 = vmatprep.mubr.f32.mxu0 %v103_v43  ;;  %389 = vmatprep.mubr.f32.mxu1 %v103_v43 }
  0x72   :  { %v117_v7 = vld [vmem:[#allocation5 + $0x68] sm:$0xff]  ;;  %v116_v11 = vld [vmem:[#allocation5 + $0x60] sm:$0xff]  ;;  %v111_v46 = vld [vmem:[#allocation5 + $0x38] sm:$0xff] }
  0x73   :  { %v1619_v9 = vpack.c.bf16 %v117_v7, %v113_v6  ;;  %v121_v12 = vld [vmem:[#allocation5 + $0x88] sm:$0xff]  ;;  %1616 = vmatprep.subr.bf16.mxu0 %v1615_v4  ;;  %v1621_v14 = vpack.c.bf16 %v116_v11, %v112_v10  ;;  %v120_v16 = vld [vmem:[#allocation5 + $0x80] sm:$0xff]  ;;  %v106_v47 = vld [vmem:[#allocation5 + $0x10] sm:$0xff]  ;;  %v1679_v48 = vpack.c.bf16 %v111_v46, %v107_v44 }
  0x74   :  { %v125_v13 = vld [vmem:[#allocation5 + $0xa8] sm:$0xff]  ;;  %1618 = vmatpush1.bf16.msra.mxu0 %v1617_v8  ;;  %v124_v17 = vld [vmem:[#allocation5 + $0xa0] sm:$0xff]  ;;  %v110_v49 = vld [vmem:[#allocation5 + $0x30] sm:$0xff] }
  0x75   :  { %1620 = vmatprep.subr.bf16.mxu0 %v1619_v9  ;;  %v1623_v15 = vpack.c.bf16 %v125_v13, %v121_v12  ;;  %v129_v18 = vld [vmem:[#allocation5 + $0xc8] sm:$0xff]  ;;  %v1625_v20 = vpack.c.bf16 %v124_v17, %v120_v16  ;;  %v128_v22 = vld [vmem:[#allocation5 + $0xc0] sm:$0xff]  ;;  %v115_v50 = vld [vmem:[#allocation5 + $0x58] sm:$0xff]  ;;  %v1681_v53 = vpack.c.bf16 %v110_v49, %v106_v47  ;;  %1680 = vmatprep.subr.bf16.mxu1 %v1679_v48 }
  0x76   :  { %v133_v19 = vld [vmem:[#allocation5 + $0xe8] sm:$0xff]  ;;  %v132_v23 = vld [vmem:[#allocation5 + $0xe0] sm:$0xff]  ;;  %v119_v51 = vld [vmem:[#allocation5 + $0x78] sm:$0xff] }
  0x77   :  { %v1627_v21 = vpack.c.bf16 %v133_v19, %v129_v18  ;;  %v137_v24 = vld [vmem:[#allocation5 + $0x108] sm:$0xff]  ;;  %v1629_v26 = vpack.c.bf16 %v132_v23, %v128_v22  ;;  %v136_v28 = vld [vmem:[#allocation5 + $0x100] sm:$0xff]  ;;  %v1683_v54 = vpack.c.bf16 %v119_v51, %v115_v50  ;;  %v114_v55 = vld [vmem:[#allocation5 + $0x50] sm:$0xff]  ;;  %1682 = vmatpush1.bf16.msra.mxu1 %v1681_v53 }
  0x78   :  { %1622 = vmatpush1.bf16.msra.mxu0 %v1621_v14  ;;  %v141_v25 = vld [vmem:[#allocation5 + $0x128] sm:$0xff]  ;;  %v140_v29 = vld [vmem:[#allocation5 + $0x120] sm:$0xff]  ;;  %v118_v56 = vld [vmem:[#allocation5 + $0x70] sm:$0xff] }
  0x79   :  { %1624 = vmatprep.subr.bf16.mxu0 %v1623_v15  ;;  %v1631_v27 = vpack.c.bf16 %v141_v25, %v137_v24  ;;  %v145_v30 = vld [vmem:[#allocation5 + $0x148] sm:$0xff]  ;;  %v1633_v32 = vpack.c.bf16 %v140_v29, %v136_v28  ;;  %v144_v34 = vld [vmem:[#allocation5 + $0x140] sm:$0xff]  ;;  %v123_v57 = vld [vmem:[#allocation5 + $0x98] sm:$0xff]  ;;  %v1685_v0 = vpack.c.bf16 %v118_v56, %v114_v55  ;;  %1684 = vmatprep.subr.bf16.mxu1 %v1683_v54 }
  0x7a   :  { %v149_v31 = vld [vmem:[#allocation5 + $0x168] sm:$0xff]  ;;  %v148_v35 = vld [vmem:[#allocation5 + $0x160] sm:$0xff]  ;;  %v127_v61 = vld [vmem:[#allocation5 + $0xb8] sm:$0xff] }
  0x7b   :  { %v1635_v33 = vpack.c.bf16 %v149_v31, %v145_v30  ;;  %v153_v36 = vld [vmem:[#allocation5 + $0x188] sm:$0xff]  ;;  %v1637_v38 = vpack.c.bf16 %v148_v35, %v144_v34  ;;  %v152_v39 = vld [vmem:[#allocation5 + $0x180] sm:$0xff]  ;;  %v1687_v1 = vpack.c.bf16 %v127_v61, %v123_v57  ;;  %v122_v2 = vld [vmem:[#allocation5 + $0x90] sm:$0xff]  ;;  %1686 = vmatpush1.bf16.msra.mxu1 %v1685_v0 }
  0x7c   :  { %1626 = vmatpush1.bf16.msra.mxu0 %v1625_v20  ;;  %v157_v37 = vld [vmem:[#allocation5 + $0x1a8] sm:$0xff]  ;;  %v156_v40 = vld [vmem:[#allocation5 + $0x1a0] sm:$0xff]  ;;  %v126_v3 = vld [vmem:[#allocation5 + $0xb0] sm:$0xff] }
  0x7d   :  { %1628 = vmatprep.subr.bf16.mxu0 %v1627_v21  ;;  %v1639_v41 = vpack.c.bf16 %v157_v37, %v153_v36  ;;  %v161_v42 = vld [vmem:[#allocation5 + $0x1c8] sm:$0xff]  ;;  %v1641_v52 = vpack.c.bf16 %v156_v40, %v152_v39  ;;  %v160_v59 = vld [vmem:[#allocation5 + $0x1c0] sm:$0xff]  ;;  %v131_v5 = vld [vmem:[#allocation5 + $0xd8] sm:$0xff]  ;;  %v1689_v12 = vpack.c.bf16 %v126_v3, %v122_v2  ;;  %1688 = vmatprep.subr.bf16.mxu1 %v1687_v1 }
  0x7e   :  { %v165_v45 = vld [vmem:[#allocation5 + $0x1e8] sm:$0xff]  ;;  %v164_v60 = vld [vmem:[#allocation5 + $0x1e0] sm:$0xff]  ;;  %v135_v6 = vld [vmem:[#allocation5 + $0xf8] sm:$0xff] }
  0x7f   :  { %v1643_v58 = vpack.c.bf16 %v165_v45, %v161_v42  ;;  %v169_v62 = vld [vmem:[#allocation5 + $0x208] sm:$0xff]  ;;  %v1645_v4 = vpack.c.bf16 %v164_v60, %v160_v59  ;;  %v168_v8 = vld [vmem:[#allocation5 + $0x200] sm:$0xff]  ;;  %v1691_v13 = vpack.c.bf16 %v135_v6, %v131_v5  ;;  %v130_v14 = vld [vmem:[#allocation5 + $0xd0] sm:$0xff]  ;;  %1690 = vmatpush1.bf16.msra.mxu1 %v1689_v12 }
  0x80   :  { %1630 = vmatpush1.bf16.msra.mxu0 %v1629_v26  ;;  %v173_v63 = vld [vmem:[#allocation5 + $0x228] sm:$0xff]  ;;  %v172_v9 = vld [vmem:[#allocation5 + $0x220] sm:$0xff]  ;;  %v134_v15 = vld [vmem:[#allocation5 + $0xf0] sm:$0xff] }
  0x81   :  { %1632 = vmatprep.subr.bf16.mxu0 %v1631_v27  ;;  %v1647_v7 = vpack.c.bf16 %v173_v63, %v169_v62  ;;  %v177_v10 = vld [vmem:[#allocation5 + $0x248] sm:$0xff]  ;;  %v1649_v16 = vpack.c.bf16 %v172_v9, %v168_v8  ;;  %v139_v17 = vld [vmem:[#allocation5 + $0x118] sm:$0xff]  ;;  %v176_v20 = vld [vmem:[#allocation5 + $0x240] sm:$0xff]  ;;  %v1693_v24 = vpack.c.bf16 %v134_v15, %v130_v14  ;;  %1692 = vmatprep.subr.bf16.mxu1 %v1691_v13 }
  0x82   :  { %v181_v11 = vld [vmem:[#allocation5 + $0x268] sm:$0xff]  ;;  %v143_v18 = vld [vmem:[#allocation5 + $0x138] sm:$0xff]  ;;  %v180_v21 = vld [vmem:[#allocation5 + $0x260] sm:$0xff] }
  0x83   :  { %v1651_v19 = vpack.c.bf16 %v181_v11, %v177_v10  ;;  %v185_v22 = vld [vmem:[#allocation5 + $0x288] sm:$0xff]  ;;  %v1695_v25 = vpack.c.bf16 %v143_v18, %v139_v17  ;;  %v138_v26 = vld [vmem:[#allocation5 + $0x110] sm:$0xff]  ;;  %v1653_v28 = vpack.c.bf16 %v180_v21, %v176_v20  ;;  %v147_v29 = vld [vmem:[#allocation5 + $0x158] sm:$0xff]  ;;  %1694 = vmatpush1.bf16.msra.mxu1 %v1693_v24 }
  0x84   :  { %1634 = vmatpush1.bf16.msra.mxu0 %v1633_v32  ;;  %v189_v23 = vld [vmem:[#allocation5 + $0x2a8] sm:$0xff]  ;;  %v142_v27 = vld [vmem:[#allocation5 + $0x130] sm:$0xff]  ;;  %v151_v30 = vld [vmem:[#allocation5 + $0x178] sm:$0xff] }
  0x85   :  { %1636 = vmatprep.subr.bf16.mxu0 %v1635_v33  ;;  %v1655_v31 = vpack.c.bf16 %v189_v23, %v185_v22  ;;  %v184_v32 = vld [vmem:[#allocation5 + $0x280] sm:$0xff]  ;;  %v193_v34 = vld [vmem:[#allocation5 + $0x2c8] sm:$0xff]  ;;  %v1697_v36 = vpack.c.bf16 %v142_v27, %v138_v26  ;;  %1696 = vmatprep.subr.bf16.mxu1 %v1695_v25  ;;  %v1699_v37 = vpack.c.bf16 %v151_v30, %v147_v29  ;;  %v150_v39 = vld [vmem:[#allocation5 + $0x170] sm:$0xff] }
  0x86   :  { %v188_v33 = vld [vmem:[#allocation5 + $0x2a0] sm:$0xff]  ;;  %v197_v35 = vld [vmem:[#allocation5 + $0x2e8] sm:$0xff]  ;;  %v159_v42 = vld [vmem:[#allocation5 + $0x1b8] sm:$0xff] }
  0x87   :  { %v1657_v40 = vpack.c.bf16 %v188_v33, %v184_v32  ;;  %v1659_v43 = vpack.c.bf16 %v197_v35, %v193_v34  ;;  %v192_v44 = vld [vmem:[#allocation5 + $0x2c0] sm:$0xff]  ;;  %v201_v46 = vld [vmem:[#allocation5 + $0x308] sm:$0xff]  ;;  %1698 = vmatpush1.bf16.msra.mxu1 %v1697_v36  ;;  %v154_v50 = vld [vmem:[#allocation5 + $0x190] sm:$0xff] }
  0x88   :  { %1638 = vmatpush1.bf16.msra.mxu0 %v1637_v38  ;;  %v146_v38 = vld [vmem:[#allocation5 + $0x150] sm:$0xff]  ;;  %v196_v45 = vld [vmem:[#allocation5 + $0x2e0] sm:$0xff]  ;;  %v205_v47 = vld [vmem:[#allocation5 + $0x328] sm:$0xff]  ;;  %1700 = vmatprep.subr.bf16.mxu1 %v1699_v37 }
  0x89   :  { %1640 = vmatprep.subr.bf16.mxu0 %v1639_v41  ;;  %v155_v41 = vld [vmem:[#allocation5 + $0x198] sm:$0xff]  ;;  %v1701_v48 = vpack.c.bf16 %v150_v39, %v146_v38  ;;  %v158_v51 = vld [vmem:[#allocation5 + $0x1b0] sm:$0xff]  ;;  %v1663_v55 = vpack.c.bf16 %v205_v47, %v201_v46  ;;  %v200_v56 = vld [vmem:[#allocation5 + $0x300] sm:$0xff] }
  0x8a   :  { %v1703_v49 = vpack.c.bf16 %v159_v42, %v155_v41  ;;  %v163_v53 = vld [vmem:[#allocation5 + $0x1d8] sm:$0xff]  ;;  %v204_v57 = vld [vmem:[#allocation5 + $0x320] sm:$0xff]  ;;  %v213_v59 = vld [vmem:[#allocation5 + $0x368] sm:$0xff]  ;;  %v1705_v60 = vpack.c.bf16 %v158_v51, %v154_v50 }
  0x8b   :  { %v167_v54 = vld [vmem:[#allocation5 + $0x1f8] sm:$0xff]  ;;  %1702 = vmatpush1.bf16.msra.mxu1 %v1701_v48  ;;  %v162_v62 = vld [vmem:[#allocation5 + $0x1d0] sm:$0xff]  ;;  %v1665_v0 = vpack.c.bf16 %v204_v57, %v200_v56  ;;  %v212_v5 = vld [vmem:[#allocation5 + $0x360] sm:$0xff] }
  0x8c   :  { %1642 = vmatpush1.bf16.msra.mxu0 %v1641_v52  ;;  %v1661_v52 = vpack.c.bf16 %v196_v45, %v192_v44  ;;  %1704 = vmatprep.subr.bf16.mxu1 %v1703_v49  ;;  %v1707_v61 = vpack.c.bf16 %v167_v54, %v163_v53  ;;  %v166_v63 = vld [vmem:[#allocation5 + $0x1f0] sm:$0xff]  ;;  %v171_v1 = vld [vmem:[#allocation5 + $0x218] sm:$0xff]  ;;  %v217_v6 = vld [vmem:[#allocation5 + $0x388] sm:$0xff] }
  0x8d   :  { %1644 = vmatprep.subr.bf16.mxu0 %v1643_v58  ;;  %v209_v58 = vld [vmem:[#allocation5 + $0x348] sm:$0xff]  ;;  %v175_v2 = vld [vmem:[#allocation5 + $0x238] sm:$0xff]  ;;  %v1709_v8 = vpack.c.bf16 %v166_v63, %v162_v62  ;;  %v170_v10 = vld [vmem:[#allocation5 + $0x210] sm:$0xff] }
  0x8e   :  { %v1667_v3 = vpack.c.bf16 %v213_v59, %v209_v58  ;;  %v1711_v9 = vpack.c.bf16 %v175_v2, %v171_v1  ;;  %v174_v11 = vld [vmem:[#allocation5 + $0x230] sm:$0xff]  ;;  %v179_v13 = vld [vmem:[#allocation5 + $0x258] sm:$0xff]  ;;  %v220_v17 = vld [vmem:[#allocation5 + $0x3a0] sm:$0xff] }
  0x8f   :  { %1706 = vmatpush1.bf16.msra.mxu1 %v1705_v60  ;;  %v183_v14 = vld [vmem:[#allocation5 + $0x278] sm:$0xff]  ;;  %v225_v18 = vld [vmem:[#allocation5 + $0x3c8] sm:$0xff]  ;;  %v1713_v20 = vpack.c.bf16 %v174_v11, %v170_v10  ;;  %v178_v22 = vld [vmem:[#allocation5 + $0x250] sm:$0xff] }
  0x90   :  { %1646 = vmatpush1.bf16.msra.mxu0 %v1645_v4  ;;  %v208_v4 = vld [vmem:[#allocation5 + $0x340] sm:$0xff]  ;;  %1708 = vmatprep.subr.bf16.mxu1 %v1707_v61  ;;  %v1715_v21 = vpack.c.bf16 %v183_v14, %v179_v13  ;;  %v182_v23 = vld [vmem:[#allocation5 + $0x270] sm:$0xff]  ;;  %v187_v25 = vld [vmem:[#allocation5 + $0x298] sm:$0xff] }
  0x91   :  { %1648 = vmatprep.subr.bf16.mxu0 %v1647_v7  ;;  %v221_v7 = vld [vmem:[#allocation5 + $0x3a8] sm:$0xff]  ;;  %v1669_v12 = vpack.c.bf16 %v212_v5, %v208_v4  ;;  %v191_v26 = vld [vmem:[#allocation5 + $0x2b8] sm:$0xff]  ;;  %v228_v29 = vld [vmem:[#allocation5 + $0x3e0] sm:$0xff]  ;;  %v1717_v30 = vpack.c.bf16 %v182_v23, %v178_v22 }
  0x92   :  { %v1671_v15 = vpack.c.bf16 %v221_v7, %v217_v6  ;;  %v409_v32 = vld [vmem:[#allocation8 + $0x48] sm:$0xff]  ;;  %v1719_v33 = vpack.c.bf16 %v191_v26, %v187_v25  ;;  %v195_v37 = vld [vmem:[#allocation5 + $0x2d8] sm:$0xff]  ;;  %v408_v41 = vld [vmem:[#allocation8 + $0x40] sm:$0xff] }
  0x93   :  { %1710 = vmatpush1.bf16.msra.mxu1 %v1709_v8  ;;  %v186_v34 = vld [vmem:[#allocation5 + $0x290] sm:$0xff]  ;;  %v199_v38 = vld [vmem:[#allocation5 + $0x2f8] sm:$0xff]  ;;  %v416_v53 = vld [vmem:[#allocation8 + $0x80] sm:$0xff] }
  0x94   :  { %1650 = vmatpush1.bf16.msra.mxu0 %v1649_v16  ;;  %v216_v16 = vld [vmem:[#allocation5 + $0x380] sm:$0xff]  ;;  %1712 = vmatprep.subr.bf16.mxu1 %v1711_v9  ;;  %v190_v35 = vld [vmem:[#allocation5 + $0x2b0] sm:$0xff]  ;;  %v1723_v45 = vpack.c.bf16 %v199_v38, %v195_v37  ;;  %v203_v49 = vld [vmem:[#allocation5 + $0x318] sm:$0xff] }
  0x95   :  { %1652 = vmatprep.subr.bf16.mxu0 %v1651_v19  ;;  %v229_v19 = vld [vmem:[#allocation5 + $0x3e8] sm:$0xff]  ;;  %v1673_v24 = vpack.c.bf16 %v220_v17, %v216_v16  ;;  %v1721_v42 = vpack.c.bf16 %v190_v35, %v186_v34  ;;  %v194_v46 = vld [vmem:[#allocation5 + $0x2d0] sm:$0xff]  ;;  %v207_v50 = vld [vmem:[#allocation5 + $0x338] sm:$0xff] }
  0x96   :  { %v1675_v27 = vpack.c.bf16 %v229_v19, %v225_v18  ;;  %v425_v44 = vld [vmem:[#allocation8 + $0xc8] sm:$0xff]  ;;  %v424_v54 = vld [vmem:[#allocation8 + $0xc0] sm:$0xff]  ;;  %v1727_v58 = vpack.c.bf16 %v207_v50, %v203_v49  ;;  %v211_v61 = vld [vmem:[#allocation5 + $0x358] sm:$0xff] }
  0x97   :  { %1714 = vmatpush1.bf16.msra.mxu1 %v1713_v20  ;;  %v198_v47 = vld [vmem:[#allocation5 + $0x2f0] sm:$0xff]  ;;  %v215_v62 = vld [vmem:[#allocation5 + $0x378] sm:$0xff]  ;;  %v1749_v63 = vpack.c.bf16 %v424_v54, %v416_v53  ;;  %v432_v1 = vld [vmem:[#allocation8 + $0x100] sm:$0xff] }
  0x98   :  { %1654 = vmatpush1.bf16.msra.mxu0 %v1653_v28  ;;  %v224_v28 = vld [vmem:[#allocation5 + $0x3c0] sm:$0xff]  ;;  %1716 = vmatprep.subr.bf16.mxu1 %v1715_v21  ;;  %v2550_v48 = vld [vmem:[#allocation3] sm:$0xff]  ;;  %v1731_v6 = vpack.c.bf16 %v215_v62, %v211_v61  ;;  %v219_v9 = vld [vmem:[#allocation5 + $0x398] sm:$0xff] }
  0x99   :  { %1656 = vmatprep.subr.bf16.mxu0 %v1655_v31  ;;  %v401_v31 = vld [vmem:[#allocation8 + $0x8] sm:$0xff]  ;;  %v1677_v36 = vpack.c.bf16 %v228_v29, %v224_v28  ;;  %v440_v2 = vld [vmem:[#allocation8 + $0x140] sm:$0xff]  ;;  %v223_v10 = vld [vmem:[#allocation5 + $0x3b8] sm:$0xff] }
  0x9a   :  { %v1743_v39 = vpack.c.bf16 %v409_v32, %v401_v31  ;;  %v433_v56 = vld [vmem:[#allocation8 + $0x108] sm:$0xff]  ;;  %v1753_v11 = vpack.c.bf16 %v440_v2, %v432_v1  ;;  %v448_v13 = vld [vmem:[#allocation8 + $0x180] sm:$0xff]  ;;  %v1735_v18 = vpack.c.bf16 %v223_v10, %v219_v9  ;;  %v227_v21 = vld [vmem:[#allocation5 + $0x3d8] sm:$0xff] }
  0x9b   :  { %1718 = vmatpush1.bf16.msra.mxu1 %v1717_v30  ;;  %v441_v57 = vld [vmem:[#allocation8 + $0x148] sm:$0xff]  ;;  %v456_v14 = vld [vmem:[#allocation8 + $0x1c0] sm:$0xff]  ;;  %v231_v22 = vld [vmem:[#allocation5 + $0x3f8] sm:$0xff] }
  0x9c   :  { %1658 = vmatpush1.bf16.msra.mxu0 %v1657_v40  ;;  %v400_v40 = vld [vmem:[#allocation8] sm:$0xff]  ;;  %1720 = vmatprep.subr.bf16.mxu1 %v1719_v33  ;;  %v202_v59 = vld [vmem:[#allocation5 + $0x310] sm:$0xff]  ;;  %v1757_v23 = vpack.c.bf16 %v456_v14, %v448_v13  ;;  %v1739_v30 = vpack.c.bf16 %v231_v22, %v227_v21  ;;  %v403_v33 = vld [vmem:[#allocation8 + $0x18] sm:$0xff] }
  0x9d   :  { %1660 = vmatprep.subr.bf16.mxu0 %v1659_v43  ;;  %v417_v43 = vld [vmem:[#allocation8 + $0x88] sm:$0xff]  ;;  %v1745_v51 = vpack.c.bf16 %v408_v41, %v400_v40  ;;  %v464_v25 = vld [vmem:[#allocation8 + $0x200] sm:$0xff]  ;;  %v411_v34 = vld [vmem:[#allocation8 + $0x58] sm:$0xff] }
  0x9e   :  { %v206_v60 = vld [vmem:[#allocation5 + $0x330] sm:$0xff]  ;;  %v472_v26 = vld [vmem:[#allocation8 + $0x240] sm:$0xff] }
  0x9f   :  { %1722 = vmatpush1.bf16.msra.mxu1 %v1721_v42  ;;  %v449_v4 = vld [vmem:[#allocation8 + $0x188] sm:$0xff]  ;;  %v1761_v35 = vpack.c.bf16 %v472_v26, %v464_v25  ;;  %v480_v37 = vld [vmem:[#allocation8 + $0x280] sm:$0xff]  ;;  %v1871_v42 = vpack.c.bf16 %v411_v34, %v403_v33 }
  0xa0   :  { %1662 = vmatpush1.bf16.msra.mxu0 %v1661_v52  ;;  %v1747_v52 = vpack.c.bf16 %v425_v44, %v417_v43  ;;  %1724 = vmatprep.subr.bf16.mxu1 %v1723_v45  ;;  %v457_v5 = vld [vmem:[#allocation8 + $0x1c8] sm:$0xff]  ;;  %v488_v38 = vld [vmem:[#allocation8 + $0x2c0] sm:$0xff]  ;;  %v402_v43 = vld [vmem:[#allocation8 + $0x10] sm:$0xff] }
  0xa1   :  { %1664 = vmatprep.subr.bf16.mxu0 %v1663_v55  ;;  %v1725_v55 = vpack.c.bf16 %v198_v47, %v194_v46  ;;  %v210_v7 = vld [vmem:[#allocation5 + $0x350] sm:$0xff]  ;;  %v419_v45 = vld [vmem:[#allocation8 + $0x98] sm:$0xff]  ;;  %v1765_v47 = vpack.c.bf16 %v488_v38, %v480_v37  ;;  %v496_v50 = vld [vmem:[#allocation8 + $0x300] sm:$0xff] }
  0xa2   :  { %v214_v8 = vld [vmem:[#allocation5 + $0x370] sm:$0xff]  ;;  %v427_v46 = vld [vmem:[#allocation8 + $0xd8] sm:$0xff]  ;;  %v512_v62 = vld [vmem:[#allocation8 + $0x380] sm:$0xff] }
  0xa3   :  { %1726 = vmatpush1.bf16.msra.mxu1 %v1725_v55  ;;  %v465_v16 = vld [vmem:[#allocation8 + $0x208] sm:$0xff]  ;;  %v410_v44 = vld [vmem:[#allocation8 + $0x50] sm:$0xff]  ;;  %v1875_v55 = vpack.c.bf16 %v427_v46, %v419_v45  ;;  %v528_v10 = vld [vmem:[#allocation8 + $0x400] sm:$0xff] }
  0xa4   :  { %1666 = vmatpush1.bf16.msra.mxu0 %v1665_v0  ;;  %v1751_v0 = vpack.c.bf16 %v441_v57, %v433_v56  ;;  %1728 = vmatprep.subr.bf16.mxu1 %v1727_v58  ;;  %v473_v17 = vld [vmem:[#allocation8 + $0x248] sm:$0xff]  ;;  %v418_v56 = vld [vmem:[#allocation8 + $0x90] sm:$0xff]  ;;  %v435_v58 = vld [vmem:[#allocation8 + $0x118] sm:$0xff] }
  0xa5   :  { %1668 = vmatprep.subr.bf16.mxu0 %v1667_v3  ;;  %v1729_v3 = vpack.c.bf16 %v206_v60, %v202_v59  ;;  %v218_v19 = vld [vmem:[#allocation5 + $0x390] sm:$0xff]  ;;  %v443_v59 = vld [vmem:[#allocation8 + $0x158] sm:$0xff]  ;;  %v544_v21 = vld [vmem:[#allocation8 + $0x480] sm:$0xff] }
  0xa6   :  { %v222_v20 = vld [vmem:[#allocation5 + $0x3b0] sm:$0xff]  ;;  %v552_v22 = vld [vmem:[#allocation8 + $0x4c0] sm:$0xff] }
  0xa7   :  { %1730 = vmatpush1.bf16.msra.mxu1 %v1729_v3  ;;  %v481_v28 = vld [vmem:[#allocation8 + $0x288] sm:$0xff]  ;;  %v426_v57 = vld [vmem:[#allocation8 + $0xd0] sm:$0xff]  ;;  %v1879_v3 = vpack.c.bf16 %v443_v59, %v435_v58  ;;  %v560_v33 = vld [vmem:[#allocation8 + $0x500] sm:$0xff] }
  0xa8   :  { %1670 = vmatpush1.bf16.msra.mxu0 %v1669_v12  ;;  %v1755_v12 = vpack.c.bf16 %v457_v5, %v449_v4  ;;  %1732 = vmatprep.subr.bf16.mxu1 %v1731_v6  ;;  %v489_v29 = vld [vmem:[#allocation8 + $0x2c8] sm:$0xff]  ;;  %v434_v4 = vld [vmem:[#allocation8 + $0x110] sm:$0xff]  ;;  %v451_v6 = vld [vmem:[#allocation8 + $0x198] sm:$0xff] }
  0xa9   :  { %1672 = vmatprep.subr.bf16.mxu0 %v1671_v15  ;;  %v1733_v15 = vpack.c.bf16 %v214_v8, %v210_v7  ;;  %v226_v31 = vld [vmem:[#allocation5 + $0x3d0] sm:$0xff]  ;;  %v459_v7 = vld [vmem:[#allocation8 + $0x1d8] sm:$0xff]  ;;  %v568_v34 = vld [vmem:[#allocation8 + $0x540] sm:$0xff] }
  0xaa   :  { %v230_v32 = vld [vmem:[#allocation5 + $0x3f0] sm:$0xff]  ;;  %v1883_v14 = vpack.c.bf16 %v459_v7, %v451_v6  ;;  %v576_v45 = vld [vmem:[#allocation8 + $0x580] sm:$0xff] }
  0xab   :  { %1734 = vmatpush1.bf16.msra.mxu1 %v1733_v15  ;;  %v497_v40 = vld [vmem:[#allocation8 + $0x308] sm:$0xff]  ;;  %v442_v5 = vld [vmem:[#allocation8 + $0x150] sm:$0xff]  ;;  %v584_v46 = vld [vmem:[#allocation8 + $0x5c0] sm:$0xff] }
  0xac   :  { %1674 = vmatpush1.bf16.msra.mxu0 %v1673_v24  ;;  %v1759_v24 = vpack.c.bf16 %v473_v17, %v465_v16  ;;  %1736 = vmatprep.subr.bf16.mxu1 %v1735_v18  ;;  %v505_v41 = vld [vmem:[#allocation8 + $0x348] sm:$0xff]  ;;  %v450_v15 = vld [vmem:[#allocation8 + $0x190] sm:$0xff]  ;;  %v467_v17 = vld [vmem:[#allocation8 + $0x218] sm:$0xff] }
  0xad   :  { %1676 = vmatprep.subr.bf16.mxu0 %v1675_v27  ;;  %v1737_v27 = vpack.c.bf16 %v222_v20, %v218_v19  ;;  %v1767_v49 = vpack.c.bf16 %v505_v41, %v497_v40  ;;  %v513_v53 = vld [vmem:[#allocation8 + $0x388] sm:$0xff]  ;;  %v458_v16 = vld [vmem:[#allocation8 + $0x1d0] sm:$0xff]  ;;  %v475_v18 = vld [vmem:[#allocation8 + $0x258] sm:$0xff] }
  0xae   :  { %v521_v54 = vld [vmem:[#allocation8 + $0x3c8] sm:$0xff]  ;;  %v1887_v26 = vpack.c.bf16 %v475_v18, %v467_v17  ;;  %v490_v40 = vld [vmem:[#allocation8 + $0x2d0] sm:$0xff]  ;;  %v499_v41 = vld [vmem:[#allocation8 + $0x318] sm:$0xff] }
  0xaf   :  { %1738 = vmatpush1.bf16.msra.mxu1 %v1737_v27  ;;  %v1771_v61 = vpack.c.bf16 %v521_v54, %v513_v53  ;;  %v529_v1 = vld [vmem:[#allocation8 + $0x408] sm:$0xff]  ;;  %v466_v27 = vld [vmem:[#allocation8 + $0x210] sm:$0xff]  ;;  %v515_v54 = vld [vmem:[#allocation8 + $0x398] sm:$0xff] }
  0xb0   :  { %1678 = vmatpush1.bf16.msra.mxu0 %v1677_v36  ;;  %v1763_v36 = vpack.c.bf16 %v489_v29, %v481_v28  ;;  %1740 = vmatprep.subr.bf16.mxu1 %v1739_v30  ;;  %v537_v2 = vld [vmem:[#allocation8 + $0x448] sm:$0xff]  ;;  %v474_v28 = vld [vmem:[#allocation8 + $0x250] sm:$0xff]  ;;  %v483_v29 = vld [vmem:[#allocation8 + $0x298] sm:$0xff] }
  0xb1   :  { %1744 = vmatprep.subr.bf16.mxu0 %v1743_v39  ;;  %v1741_v39 = vpack.c.bf16 %v230_v32, %v226_v31  ;;  %v1775_v9 = vpack.c.bf16 %v537_v2, %v529_v1  ;;  %v553_v13 = vld [vmem:[#allocation8 + $0x4c8] sm:$0xff]  ;;  %v491_v30 = vld [vmem:[#allocation8 + $0x2d8] sm:$0xff]  ;;  %v1781_v31 = vpack.c.bf16 %v552_v22, %v544_v21  ;;  %v506_v53 = vld [vmem:[#allocation8 + $0x350] sm:$0xff] }
  0xb2   :  { %v569_v25 = vld [vmem:[#allocation8 + $0x548] sm:$0xff]  ;;  %v1891_v38 = vpack.c.bf16 %v491_v30, %v483_v29  ;;  %v592_v58 = vld [vmem:[#allocation8 + $0x600] sm:$0xff]  ;;  %v522_v1 = vld [vmem:[#allocation8 + $0x3d0] sm:$0xff] }
  0xb3   :  { %319 = vmatmul.mubr.f32.vlgmr.msra.gmra.mrb[0].mxu0 %v2550_v48  ;;  %1742 = vmatpush1.bf16.msra.mxu1 %v1741_v39  ;;  %v585_v37 = vld [vmem:[#allocation8 + $0x5c8] sm:$0xff]  ;;  %v482_v39 = vld [vmem:[#allocation8 + $0x290] sm:$0xff]  ;;  %v600_v59 = vld [vmem:[#allocation8 + $0x640] sm:$0xff] }
  0xb4   :  { %1746 = vmatpush1.bf16.msra.mxu0 %v1745_v51  ;;  %v504_v51 = vld [vmem:[#allocation8 + $0x340] sm:$0xff]  ;;  %1872 = vmatprep.subr.bf16.mxu1 %v1871_v42  ;;  %v507_v42 = vld [vmem:[#allocation8 + $0x358] sm:$0xff]  ;;  %v546_v21 = vld [vmem:[#allocation8 + $0x490] sm:$0xff] }
  0xb5   :  { %1748 = vmatprep.subr.bf16.mxu0 %v1747_v52  ;;  %v1873_v52 = vpack.c.bf16 %v410_v44, %v402_v43  ;;  %v1769_v60 = vpack.c.bf16 %v504_v51, %v496_v50  ;;  %v1785_v43 = vpack.c.bf16 %v568_v34, %v560_v33  ;;  %v601_v50 = vld [vmem:[#allocation8 + $0x648] sm:$0xff]  ;;  %v1895_v51 = vpack.c.bf16 %v507_v42, %v499_v41  ;;  %v531_v2 = vld [vmem:[#allocation8 + $0x418] sm:$0xff]  ;;  %v608_v6 = vld [vmem:[#allocation8 + $0x680] sm:$0xff] }
  0xb6   :  { %390 = vmatmul.mubr.f32.vlgmr.msra.gmra.mrb[0].mxu1 %v2550_v48  ;;  %v536_v48 = vld [vmem:[#allocation8 + $0x440] sm:$0xff]  ;;  %v554_v22 = vld [vmem:[#allocation8 + $0x4d0] sm:$0xff]  ;;  %v579_v30 = vld [vmem:[#allocation8 + $0x598] sm:$0xff] }
  0xb7   :  { %1874 = vmatpush1.bf16.msra.mxu1 %v1873_v52  ;;  %v1777_v19 = vpack.c.bf16 %v536_v48, %v528_v10  ;;  %v498_v52 = vld [vmem:[#allocation8 + $0x310] sm:$0xff]  ;;  %v616_v7 = vld [vmem:[#allocation8 + $0x6c0] sm:$0xff]  ;;  %v633_v10 = vld [vmem:[#allocation8 + $0x748] sm:$0xff] }
  0xb8   :  { %1750 = vmatpush1.bf16.msra.mxu0 %v1749_v63  ;;  %v520_v63 = vld [vmem:[#allocation8 + $0x3c0] sm:$0xff]  ;;  %1876 = vmatprep.subr.bf16.mxu1 %v1875_v55  ;;  %v523_v55 = vld [vmem:[#allocation8 + $0x3d8] sm:$0xff]  ;;  %v570_v29 = vld [vmem:[#allocation8 + $0x550] sm:$0xff] }
  0xb9   :  { %1752 = vmatprep.subr.bf16.mxu0 %v1751_v0  ;;  %v1877_v0 = vpack.c.bf16 %v426_v57, %v418_v56  ;;  %v1773_v8 = vpack.c.bf16 %v520_v63, %v512_v62  ;;  %v1789_v56 = vpack.c.bf16 %v584_v46, %v576_v45  ;;  %v617_v62 = vld [vmem:[#allocation8 + $0x6c8] sm:$0xff]  ;;  %v1899_v63 = vpack.c.bf16 %v523_v55, %v515_v54  ;;  %v624_v17 = vld [vmem:[#allocation8 + $0x700] sm:$0xff]  ;;  %v578_v34 = vld [vmem:[#allocation8 + $0x590] sm:$0xff] }
  0xba   :  { %v632_v18 = vld [vmem:[#allocation8 + $0x740] sm:$0xff]  ;;  %v602_v41 = vld [vmem:[#allocation8 + $0x650] sm:$0xff]  ;;  %v611_v42 = vld [vmem:[#allocation8 + $0x698] sm:$0xff] }
  0xbb   :  { %1878 = vmatpush1.bf16.msra.mxu1 %v1877_v0  ;;  %v514_v0 = vld [vmem:[#allocation8 + $0x390] sm:$0xff] }
  0xbc   :  { %1754 = vmatpush1.bf16.msra.mxu0 %v1753_v11  ;;  %v1881_v11 = vpack.c.bf16 %v442_v5, %v434_v4  ;;  %1880 = vmatprep.subr.bf16.mxu1 %v1879_v3  ;;  %v539_v3 = vld [vmem:[#allocation8 + $0x458] sm:$0xff]  ;;  %v1793_v4 = vpack.c.bf16 %v600_v59, %v592_v58  ;;  %v610_v46 = vld [vmem:[#allocation8 + $0x690] sm:$0xff] }
  0xbd   :  { %1756 = vmatprep.subr.bf16.mxu0 %v1755_v12  ;;  %v545_v12 = vld [vmem:[#allocation8 + $0x488] sm:$0xff]  ;;  %v1903_v48 = vpack.c.bf16 %v539_v3, %v531_v2  ;;  %v634_v54 = vld [vmem:[#allocation8 + $0x750] sm:$0xff]  ;;  %v643_v58 = vld [vmem:[#allocation8 + $0x798] sm:$0xff] }
  0xbe   :  { %v1779_v20 = vpack.c.bf16 %v553_v13, %v545_v12  ;;  %v538_v12 = vld [vmem:[#allocation8 + $0x450] sm:$0xff]  ;;  %v547_v13 = vld [vmem:[#allocation8 + $0x498] sm:$0xff] }
  0xbf   :  { %1882 = vmatpush1.bf16.msra.mxu1 %v1881_v11  ;;  %v530_v11 = vld [vmem:[#allocation8 + $0x410] sm:$0xff] }
  0xc0   :  { %1758 = vmatpush1.bf16.msra.mxu0 %v1757_v23  ;;  %v1885_v23 = vpack.c.bf16 %v458_v16, %v450_v15  ;;  %1884 = vmatprep.subr.bf16.mxu1 %v1883_v14  ;;  %v555_v14 = vld [vmem:[#allocation8 + $0x4d8] sm:$0xff]  ;;  %v1797_v15 = vpack.c.bf16 %v616_v7, %v608_v6  ;;  %v650_v2 = vld [vmem:[#allocation8 + $0x7d0] sm:$0xff] }
  0xc1   :  { %1760 = vmatprep.subr.bf16.mxu0 %v1759_v24  ;;  %v561_v24 = vld [vmem:[#allocation8 + $0x508] sm:$0xff]  ;;  %v659_v6 = vld [vmem:[#allocation8 + $0x818] sm:$0xff] }
  0xc2   :  { %v1783_v32 = vpack.c.bf16 %v569_v25, %v561_v24  ;;  %v571_v24 = vld [vmem:[#allocation8 + $0x558] sm:$0xff]  ;;  %v1801_v25 = vpack.c.bf16 %v632_v18, %v624_v17  ;;  %v656_v17 = vld [vmem:[#allocation8 + $0x800] sm:$0xff] }
  0xc3   :  { %1886 = vmatpush1.bf16.msra.mxu1 %v1885_v23  ;;  %v563_v23 = vld [vmem:[#allocation8 + $0x518] sm:$0xff]  ;;  %v664_v18 = vld [vmem:[#allocation8 + $0x840] sm:$0xff] }
  0xc4   :  { %1762 = vmatpush1.bf16.msra.mxu0 %v1761_v35  ;;  %v1889_v35 = vpack.c.bf16 %v474_v28, %v466_v27  ;;  %1888 = vmatprep.subr.bf16.mxu1 %v1887_v26  ;;  %v1909_v26 = vpack.c.bf16 %v554_v22, %v546_v21  ;;  %v1911_v27 = vpack.c.bf16 %v571_v24, %v563_v23  ;;  %v562_v28 = vld [vmem:[#allocation8 + $0x510] sm:$0xff]  ;;  %v673_v23 = vld [vmem:[#allocation8 + $0x888] sm:$0xff] }
  0xc5   :  { %1764 = vmatprep.subr.bf16.mxu0 %v1763_v36  ;;  %v577_v36 = vld [vmem:[#allocation8 + $0x588] sm:$0xff]  ;;  %v658_v21 = vld [vmem:[#allocation8 + $0x810] sm:$0xff] }
  0xc6   :  { %v1787_v44 = vpack.c.bf16 %v585_v37, %v577_v36  ;;  %v595_v36 = vld [vmem:[#allocation8 + $0x618] sm:$0xff]  ;;  %v666_v22 = vld [vmem:[#allocation8 + $0x850] sm:$0xff] }
  0xc7   :  { %1890 = vmatpush1.bf16.msra.mxu1 %v1889_v35  ;;  %v586_v35 = vld [vmem:[#allocation8 + $0x5d0] sm:$0xff]  ;;  %v603_v37 = vld [vmem:[#allocation8 + $0x658] sm:$0xff] }
  0xc8   :  { %1766 = vmatpush1.bf16.msra.mxu0 %v1765_v47  ;;  %v1893_v47 = vpack.c.bf16 %v490_v40, %v482_v39  ;;  %1892 = vmatprep.subr.bf16.mxu1 %v1891_v38  ;;  %v1917_v38 = vpack.c.bf16 %v586_v35, %v578_v34  ;;  %v1919_v39 = vpack.c.bf16 %v603_v37, %v595_v36  ;;  %v594_v40 = vld [vmem:[#allocation8 + $0x610] sm:$0xff] }
  0xc9   :  { %1768 = vmatprep.subr.bf16.mxu0 %v1767_v49  ;;  %v593_v49 = vld [vmem:[#allocation8 + $0x608] sm:$0xff]  ;;  %v674_v36 = vld [vmem:[#allocation8 + $0x890] sm:$0xff] }
  0xca   :  { %v1791_v57 = vpack.c.bf16 %v601_v50, %v593_v49  ;;  %v627_v49 = vld [vmem:[#allocation8 + $0x718] sm:$0xff]  ;;  %v682_v37 = vld [vmem:[#allocation8 + $0x8d0] sm:$0xff] }
  0xcb   :  { %1894 = vmatpush1.bf16.msra.mxu1 %v1893_v47  ;;  %v618_v47 = vld [vmem:[#allocation8 + $0x6d0] sm:$0xff]  ;;  %v635_v50 = vld [vmem:[#allocation8 + $0x758] sm:$0xff] }
  0xcc   :  { %1770 = vmatpush1.bf16.msra.mxu0 %v1769_v60  ;;  %v1897_v60 = vpack.c.bf16 %v506_v53, %v498_v52  ;;  %1896 = vmatprep.subr.bf16.mxu1 %v1895_v51  ;;  %v1925_v51 = vpack.c.bf16 %v618_v47, %v610_v46  ;;  %v1927_v52 = vpack.c.bf16 %v635_v50, %v627_v49  ;;  %v626_v53 = vld [vmem:[#allocation8 + $0x710] sm:$0xff] }
  0xcd   :  { %1772 = vmatprep.subr.bf16.mxu0 %v1771_v61  ;;  %v609_v61 = vld [vmem:[#allocation8 + $0x688] sm:$0xff]  ;;  %v1929_v55 = vpack.c.bf16 %v634_v54, %v626_v53  ;;  %v690_v49 = vld [vmem:[#allocation8 + $0x910] sm:$0xff]  ;;  %v707_v53 = vld [vmem:[#allocation8 + $0x998] sm:$0xff] }
  0xce   :  { %v1795_v5 = vpack.c.bf16 %v617_v62, %v609_v61  ;;  %v640_v61 = vld [vmem:[#allocation8 + $0x780] sm:$0xff]  ;;  %v698_v50 = vld [vmem:[#allocation8 + $0x950] sm:$0xff]  ;;  %v715_v54 = vld [vmem:[#allocation8 + $0x9d8] sm:$0xff] }
  0xcf   :  { %1898 = vmatpush1.bf16.msra.mxu1 %v1897_v60  ;;  %v651_v60 = vld [vmem:[#allocation8 + $0x7d8] sm:$0xff]  ;;  %v648_v62 = vld [vmem:[#allocation8 + $0x7c0] sm:$0xff] }
  0xd0   :  { %1774 = vmatpush1.bf16.msra.mxu0 %v1773_v8  ;;  %v1901_v8 = vpack.c.bf16 %v522_v1, %v514_v0  ;;  %1900 = vmatprep.subr.bf16.mxu1 %v1899_v63  ;;  %v1931_v63 = vpack.c.bf16 %v651_v60, %v643_v58  ;;  %v1805_v0 = vpack.c.bf16 %v648_v62, %v640_v61  ;;  %v642_v1 = vld [vmem:[#allocation8 + $0x790] sm:$0xff]  ;;  %v712_v58 = vld [vmem:[#allocation8 + $0x9c0] sm:$0xff] }
  0xd1   :  { %1776 = vmatprep.subr.bf16.mxu0 %v1775_v9  ;;  %v625_v9 = vld [vmem:[#allocation8 + $0x708] sm:$0xff]  ;;  %v1933_v3 = vpack.c.bf16 %v650_v2, %v642_v1  ;;  %v1947_v60 = vpack.c.bf16 %v715_v54, %v707_v53  ;;  %v706_v61 = vld [vmem:[#allocation8 + $0x990] sm:$0xff]  ;;  %v723_v1 = vld [vmem:[#allocation8 + $0xa18] sm:$0xff] }
  0xd2   :  { %v1799_v16 = vpack.c.bf16 %v633_v10, %v625_v9  ;;  %v234_v10 = vlaneseq  ;;  %v714_v62 = vld [vmem:[#allocation8 + $0x9d0] sm:$0xff]  ;;  %v731_v2 = vld [vmem:[#allocation8 + $0xa58] sm:$0xff]  ;;  %v768_v53 = vld [vmem:[#allocation8 + $0xb80] sm:$0xff] }
  0xd3   :  { %1902 = vmatpush1.bf16.msra.mxu1 %v1901_v8  ;;  %v667_v8 = vld [vmem:[#allocation8 + $0x858] sm:$0xff]  ;;  %v776_v54 = vld [vmem:[#allocation8 + $0xbc0] sm:$0xff] }
  0xd4   :  { %1778 = vmatpush1.bf16.msra.mxu0 %v1777_v19  ;;  %v1905_v19 = vpack.c.bf16 %v538_v12, %v530_v11  ;;  %1904 = vmatprep.subr.bf16.mxu1 %v1903_v48  ;;  %v1935_v9 = vpack.c.bf16 %v667_v8, %v659_v6  ;;  %v2554_v48 = vshrl.u32 %v234_v10, 7  ;;  %v2559_v12 = vld [vmem:[#allocation7] sm:$0xf]  ;;  %v728_v6 = vld [vmem:[#allocation8 + $0xa40] sm:$0xff]  ;;  %v722_v10 = vld [vmem:[#allocation8 + $0xa10] sm:$0xff] }
  0xd5   :  { %1780 = vmatprep.subr.bf16.mxu0 %v1779_v20  ;;  %v1907_v20 = vpack.c.bf16 %v555_v14, %v547_v13 }
  0xd6   :  { %v2557_v11 = vsub.s32 0, %v2554_v48  ;;  %v2562_v13 = vsub.s32 1, %v2554_v48 }
  0xd7   :  { %1906 = vmatpush1.bf16.msra.mxu1 %v1905_v19 }
  0xd8   :  { %1782 = vmatpush1.bf16.msra.mxu0 %v1781_v31  ;;  %1908 = vmatprep.subr.bf16.mxu1 %v1907_v20  ;;  %v587_v31 = vld [vmem:[#allocation8 + $0x5d8] sm:$0xff]  ;;  %v237_v14 = vrot.slane %v2559_v12, %v2557_v11 }
  0xd9   :  { %1784 = vmatprep.subr.bf16.mxu0 %v1783_v32  ;;  %v1913_v32 = vpack.c.bf16 %v570_v29, %v562_v28  ;;  %v1915_v33 = vpack.c.bf16 %v587_v31, %v579_v30  ;;  %v1809_v29 = vpack.c.bf16 %v664_v18, %v656_v17  ;;  %v1937_v30 = vpack.c.bf16 %v666_v22, %v658_v21  ;;  %v672_v31 = vld [vmem:[#allocation8 + $0x880] sm:$0xff]  ;;  %v739_v17 = vld [vmem:[#allocation8 + $0xa98] sm:$0xff] }
  0xda   :  { %v747_v18 = vld [vmem:[#allocation8 + $0xad8] sm:$0xff]  ;;  %v736_v21 = vld [vmem:[#allocation8 + $0xa80] sm:$0xff] }
  0xdb   :  { %1910 = vmatpush1.bf16.msra.mxu1 %v1909_v26  ;;  %v675_v26 = vld [vmem:[#allocation8 + $0x898] sm:$0xff]  ;;  %v744_v22 = vld [vmem:[#allocation8 + $0xac0] sm:$0xff] }
  0xdc   :  { %1786 = vmatpush1.bf16.msra.mxu0 %v1785_v43  ;;  %1912 = vmatprep.subr.bf16.mxu1 %v1911_v27  ;;  %v619_v43 = vld [vmem:[#allocation8 + $0x6d8] sm:$0xff] }
  0xdd   :  { %1788 = vmatprep.subr.bf16.mxu0 %v1787_v44  ;;  %v1921_v44 = vpack.c.bf16 %v602_v41, %v594_v40  ;;  %v1923_v45 = vpack.c.bf16 %v619_v43, %v611_v42  ;;  %v683_v27 = vld [vmem:[#allocation8 + $0x8d8] sm:$0xff]  ;;  %v1941_v43 = vpack.c.bf16 %v682_v37, %v674_v36  ;;  %v1829_v36 = vpack.c.bf16 %v744_v22, %v736_v21  ;;  %v802_v21 = vld [vmem:[#allocation8 + $0xc90] sm:$0xff] }
  0xde   :  { %v1939_v35 = vpack.c.bf16 %v683_v27, %v675_v26  ;;  %v691_v40 = vld [vmem:[#allocation8 + $0x918] sm:$0xff]  ;;  %v738_v26 = vld [vmem:[#allocation8 + $0xa90] sm:$0xff] }
  0xdf   :  { %1914 = vmatpush1.bf16.msra.mxu1 %v1913_v32  ;;  %v680_v32 = vld [vmem:[#allocation8 + $0x8c0] sm:$0xff]  ;;  %v699_v41 = vld [vmem:[#allocation8 + $0x958] sm:$0xff]  ;;  %v746_v27 = vld [vmem:[#allocation8 + $0xad0] sm:$0xff] }
  0xe0   :  { %1790 = vmatpush1.bf16.msra.mxu0 %v1789_v56  ;;  %1916 = vmatprep.subr.bf16.mxu1 %v1915_v33  ;;  %v641_v56 = vld [vmem:[#allocation8 + $0x788] sm:$0xff]  ;;  %v1813_v42 = vpack.c.bf16 %v680_v32, %v672_v31  ;;  %v1943_v47 = vpack.c.bf16 %v699_v41, %v691_v40  ;;  %v755_v31 = vld [vmem:[#allocation8 + $0xb18] sm:$0xff]  ;;  %v1957_v37 = vpack.c.bf16 %v746_v27, %v738_v26  ;;  %v810_v22 = vld [vmem:[#allocation8 + $0xcd0] sm:$0xff] }
  0xe1   :  { %1792 = vmatprep.subr.bf16.mxu0 %v1791_v57  ;;  %v649_v57 = vld [vmem:[#allocation8 + $0x7c8] sm:$0xff]  ;;  %v763_v32 = vld [vmem:[#allocation8 + $0xb58] sm:$0xff] }
  0xe2   :  { %v1803_v59 = vpack.c.bf16 %v649_v57, %v641_v56  ;;  %v1945_v56 = vpack.c.bf16 %v698_v50, %v690_v49  ;;  %v704_v57 = vld [vmem:[#allocation8 + $0x980] sm:$0xff]  ;;  %v779_v49 = vld [vmem:[#allocation8 + $0xbd8] sm:$0xff] }
  0xe3   :  { %1918 = vmatpush1.bf16.msra.mxu1 %v1917_v38  ;;  %v689_v38 = vld [vmem:[#allocation8 + $0x908] sm:$0xff]  ;;  %v827_v26 = vld [vmem:[#allocation8 + $0xd58] sm:$0xff] }
  0xe4   :  { %1794 = vmatpush1.bf16.msra.mxu0 %v1793_v4  ;;  %1920 = vmatprep.subr.bf16.mxu1 %v1919_v39  ;;  %v657_v4 = vld [vmem:[#allocation8 + $0x808] sm:$0xff] }
  0xe5   :  { %1796 = vmatprep.subr.bf16.mxu0 %v1795_v5  ;;  %v665_v5 = vld [vmem:[#allocation8 + $0x848] sm:$0xff] }
  0xe6   :  { %v1807_v7 = vpack.c.bf16 %v665_v5, %v657_v4  ;;  %v697_v39 = vld [vmem:[#allocation8 + $0x948] sm:$0xff]  ;;  %v1949_v4 = vpack.c.bf16 %v714_v62, %v706_v61  ;;  %v720_v5 = vld [vmem:[#allocation8 + $0xa00] sm:$0xff]  ;;  %v787_v61 = vld [vmem:[#allocation8 + $0xc18] sm:$0xff] }
  0xe7   :  { %1922 = vmatpush1.bf16.msra.mxu1 %v1921_v44  ;;  %v688_v44 = vld [vmem:[#allocation8 + $0x900] sm:$0xff]  ;;  %v1815_v46 = vpack.c.bf16 %v697_v39, %v689_v38  ;;  %v795_v62 = vld [vmem:[#allocation8 + $0xc58] sm:$0xff] }
  0xe8   :  { %1798 = vmatpush1.bf16.msra.mxu0 %v1797_v15  ;;  %1924 = vmatprep.subr.bf16.mxu1 %v1923_v45  ;;  %v241_v15 = vrot.slane %v2559_v12, %v2562_v13  ;;  %v696_v45 = vld [vmem:[#allocation8 + $0x940] sm:$0xff] }
  0xe9   :  { %1800 = vmatprep.subr.bf16.mxu0 %v1799_v16  ;;  %v752_v38 = vld [vmem:[#allocation8 + $0xb00] sm:$0xff] }
  0xea   :  { %v760_v39 = vld [vmem:[#allocation8 + $0xb40] sm:$0xff] }
  0xeb   :  { %1926 = vmatpush1.bf16.msra.mxu1 %v1925_v51  ;;  %v705_v51 = vld [vmem:[#allocation8 + $0x988] sm:$0xff] }
  0xec   :  { %1802 = vmatpush1.bf16.msra.mxu0 %v1801_v25  ;;  %1928 = vmatprep.subr.bf16.mxu1 %v1927_v52  ;;  %v681_v25 = vld [vmem:[#allocation8 + $0x8c8] sm:$0xff] }
  0xed   :  { %1804 = vmatprep.subr.bf16.mxu0 %v1803_v59  ;;  %v1811_v34 = vpack.c.bf16 %v681_v25, %v673_v23  ;;  %v713_v52 = vld [vmem:[#allocation8 + $0x9c8] sm:$0xff]  ;;  %v1955_v25 = vpack.c.bf16 %v747_v18, %v739_v17  ;;  %v800_v17 = vld [vmem:[#allocation8 + $0xc80] sm:$0xff] }
  0xee   :  { %v1819_v59 = vpack.c.bf16 %v713_v52, %v705_v51  ;;  %v1833_v51 = vpack.c.bf16 %v760_v39, %v752_v38  ;;  %v808_v18 = vld [vmem:[#allocation8 + $0xcc0] sm:$0xff]  ;;  %v833_v38 = vld [vmem:[#allocation8 + $0xd88] sm:$0xff] }
  0xef   :  { %1930 = vmatpush1.bf16.msra.mxu1 %v1929_v55  ;;  %v1817_v55 = vpack.c.bf16 %v696_v45, %v688_v44  ;;  %v762_v44 = vld [vmem:[#allocation8 + $0xb50] sm:$0xff]  ;;  %v769_v45 = vld [vmem:[#allocation8 + $0xb88] sm:$0xff]  ;;  %v1845_v27 = vpack.c.bf16 %v808_v18, %v800_v17  ;;  %v883_v18 = vld [vmem:[#allocation8 + $0xf18] sm:$0xff] }
  0xf0   :  { %1932 = vmatprep.subr.bf16.mxu1 %v1931_v63  ;;  %1806 = vmatpush1.bf16.msra.mxu0 %v1805_v0  ;;  %v721_v63 = vld [vmem:[#allocation8 + $0xa08] sm:$0xff] }
  0xf1   :  { %1808 = vmatprep.subr.bf16.mxu0 %v1807_v7  ;;  %v729_v0 = vld [vmem:[#allocation8 + $0xa48] sm:$0xff]  ;;  %v2577_v7 = vsub.s32 3, %v2554_v48 }
  0xf2   :  { %v1823_v8 = vpack.c.bf16 %v729_v0, %v721_v63  ;;  %v1837_v63 = vpack.c.bf16 %v776_v54, %v768_v53  ;;  %v841_v39 = vld [vmem:[#allocation8 + $0xdc8] sm:$0xff]  ;;  %v851_v54 = vld [vmem:[#allocation8 + $0xe18] sm:$0xff] }
  0xf3   :  { %1934 = vmatpush1.bf16.msra.mxu1 %v1933_v3  ;;  %v1821_v3 = vpack.c.bf16 %v712_v58, %v704_v57  ;;  %v249_v23 = vrot.slane %v2559_v12, %v2577_v7  ;;  %v770_v57 = vld [vmem:[#allocation8 + $0xb90] sm:$0xff]  ;;  %v857_v53 = vld [vmem:[#allocation8 + $0xe48] sm:$0xff] }
  0xf4   :  { %1936 = vmatprep.subr.bf16.mxu1 %v1935_v9  ;;  %v1951_v9 = vpack.c.bf16 %v731_v2, %v723_v1  ;;  %v778_v58 = vld [vmem:[#allocation8 + $0xbd0] sm:$0xff]  ;;  %v784_v1 = vld [vmem:[#allocation8 + $0xc00] sm:$0xff]  ;;  %v889_v17 = vld [vmem:[#allocation8 + $0xf48] sm:$0xff] }
  0xf5   :  { %v1965_v0 = vpack.c.bf16 %v778_v58, %v770_v57  ;;  %v792_v2 = vld [vmem:[#allocation8 + $0xc40] sm:$0xff] }
  0xf6   :  { %v848_v58 = vld [vmem:[#allocation8 + $0xe00] sm:$0xff] }
 0x186   :  { %v320_v16 = vpop.f32.mrb[0].mxu0 }
 0x187   :  { %v321_v19 = vadd.f32 %v320_v16, %v237_v14  ;;  %v322_v20 = vpop.f32.mrb[1].mxu0  ;;  %v730_v14 = vld [vmem:[#allocation8 + $0xa50] sm:$0xff]  ;;  %v745_v16 = vld [vmem:[#allocation8 + $0xac8] sm:$0xff] }
 0x188   :  { %v323_v24 = vadd.f32 %v322_v20, %v241_v15  ;;  %v737_v15 = vld [vmem:[#allocation8 + $0xa88] sm:$0xff]  ;;  %v1953_v20 = vpack.c.bf16 %v730_v14, %v722_v10  ;;  %v803_v10 = vld [vmem:[#allocation8 + $0xc98] sm:$0xff] }
 0x189   :  { %v2570_v33 = vmax.f32 %v321_v19, 0.0  ;;  %v1825_v19 = vpack.c.bf16 %v728_v6, %v720_v5  ;;  %v786_v5 = vld [vmem:[#allocation8 + $0xc10] sm:$0xff]  ;;  %v811_v14 = vld [vmem:[#allocation8 + $0xcd8] sm:$0xff] }
 0x18a   :  { %v2568_v28 = vmax.f32 %v323_v24, 0.0  ;;  %v1827_v24 = vpack.c.bf16 %v745_v16, %v737_v15  ;;  %v794_v6 = vld [vmem:[#allocation8 + $0xc50] sm:$0xff]  ;;  %v1841_v15 = vpack.c.bf16 %v792_v2, %v784_v1  ;;  %v873_v1 = vld [vmem:[#allocation8 + $0xec8] sm:$0xff]  ;;  %v867_v2 = vld [vmem:[#allocation8 + $0xe98] sm:$0xff] }
 0x18b   :  { %v1969_v16 = vpack.c.bf16 %v794_v6, %v786_v5  ;;  %v864_v6 = vld [vmem:[#allocation8 + $0xe80] sm:$0xff] }
 0x18c   :  { %1018 = vmatprep.mubr.f32.mxu0 %v2568_v28  ;;  %1160 = vmatprep.mubr.f32.mxu1 %v2568_v28 }
 0x18d   :  { %1019 = vmatmul.mubr.f32.vlgmr.msra.gmra.mrb[2].mxu0 %v2570_v33  ;;  %1161 = vmatmul.mubr.f32.vlgmr.msra.gmra.mrb[2].mxu1 %v2570_v33 }
 0x18e   :  { %1810 = vmatpush1.bf16.msra.mxu0 %v1809_v29  ;;  %1938 = vmatpush1.bf16.msra.mxu1 %v1937_v30  ;;  %v753_v29 = vld [vmem:[#allocation8 + $0xb08] sm:$0xff] }
 0x18f   :  { %1812 = vmatprep.subr.bf16.mxu0 %v1811_v34  ;;  %1940 = vmatprep.subr.bf16.mxu1 %v1939_v35  ;;  %v761_v30 = vld [vmem:[#allocation8 + $0xb48] sm:$0xff]  ;;  %v2581_v34 = vpop.f32.mrb[0].mxu1 }
 0x190   :  { %v393_v35 = vpop.f32.mrb[1].mxu1  ;;  %v1831_v41 = vpack.c.bf16 %v761_v30, %v753_v29  ;;  %v1973_v29 = vpack.c.bf16 %v810_v22, %v802_v21  ;;  %v816_v30 = vld [vmem:[#allocation8 + $0xd00] sm:$0xff] }
 0x191   :  { %v394_v40 = vadd.f32 %v393_v35, %v249_v23  ;;  %v817_v23 = vld [vmem:[#allocation8 + $0xd08] sm:$0xff] }
 0x192   :  { %1814 = vmatpush1.bf16.msra.mxu0 %v1813_v42  ;;  %1942 = vmatpush1.bf16.msra.mxu1 %v1941_v43  ;;  %v1959_v42 = vpack.c.bf16 %v763_v32, %v755_v31  ;;  %v754_v43 = vld [vmem:[#allocation8 + $0xb10] sm:$0xff]  ;;  %v824_v31 = vld [vmem:[#allocation8 + $0xd40] sm:$0xff] }
 0x193   :  { %1816 = vmatprep.subr.bf16.mxu0 %v1815_v46  ;;  %1944 = vmatprep.subr.bf16.mxu1 %v1943_v47  ;;  %v777_v46 = vld [vmem:[#allocation8 + $0xbc8] sm:$0xff]  ;;  %v771_v47 = vld [vmem:[#allocation8 + $0xb98] sm:$0xff]  ;;  %v2583_v50 = vmax.f32 %v394_v40, 0.0  ;;  %v1961_v52 = vpack.c.bf16 %v762_v44, %v754_v43  ;;  %v832_v44 = vld [vmem:[#allocation8 + $0xd80] sm:$0xff] }
 0x194   :  { %v835_v40 = vld [vmem:[#allocation8 + $0xd98] sm:$0xff] }
 0x195   :  { %1089 = vmatprep.mubr.f32.mxu0 %v2583_v50  ;;  %1231 = vmatprep.mubr.f32.mxu1 %v2583_v50 }
 0x196   :  { %1818 = vmatpush1.bf16.msra.mxu0 %v1817_v55  ;;  %1946 = vmatpush1.bf16.msra.mxu1 %v1945_v56  ;;  %v1835_v55 = vpack.c.bf16 %v777_v46, %v769_v45  ;;  %v1963_v56 = vpack.c.bf16 %v779_v49, %v771_v47  ;;  %v840_v45 = vld [vmem:[#allocation8 + $0xdc0] sm:$0xff]  ;;  %v1851_v46 = vpack.c.bf16 %v841_v39, %v833_v38  ;;  %v834_v49 = vld [vmem:[#allocation8 + $0xd90] sm:$0xff] }
 0x197   :  { %1820 = vmatprep.subr.bf16.mxu0 %v1819_v59  ;;  %1948 = vmatprep.subr.bf16.mxu1 %v1947_v60  ;;  %v785_v59 = vld [vmem:[#allocation8 + $0xc08] sm:$0xff]  ;;  %v896_v39 = vld [vmem:[#allocation8 + $0xf80] sm:$0xff] }
 0x198   :  { %v793_v60 = vld [vmem:[#allocation8 + $0xc48] sm:$0xff] }
 0x19a   :  { %1822 = vmatpush1.bf16.msra.mxu0 %v1821_v3  ;;  %1950 = vmatpush1.bf16.msra.mxu1 %v1949_v4  ;;  %v1839_v3 = vpack.c.bf16 %v793_v60, %v785_v59  ;;  %v1967_v4 = vpack.c.bf16 %v795_v62, %v787_v61  ;;  %v856_v59 = vld [vmem:[#allocation8 + $0xe40] sm:$0xff]  ;;  %v850_v62 = vld [vmem:[#allocation8 + $0xe10] sm:$0xff] }
 0x19b   :  { %1824 = vmatprep.subr.bf16.mxu0 %v1823_v8  ;;  %1952 = vmatprep.subr.bf16.mxu1 %v1951_v9  ;;  %v801_v8 = vld [vmem:[#allocation8 + $0xc88] sm:$0xff] }
 0x19c   :  { %v809_v9 = vld [vmem:[#allocation8 + $0xcc8] sm:$0xff] }
 0x19e   :  { %1826 = vmatpush1.bf16.msra.mxu0 %v1825_v19  ;;  %1954 = vmatpush1.bf16.msra.mxu1 %v1953_v20  ;;  %v1843_v19 = vpack.c.bf16 %v809_v9, %v801_v8  ;;  %v1971_v20 = vpack.c.bf16 %v811_v14, %v803_v10  ;;  %v872_v8 = vld [vmem:[#allocation8 + $0xec0] sm:$0xff]  ;;  %v866_v14 = vld [vmem:[#allocation8 + $0xe90] sm:$0xff] }
 0x19f   :  { %1828 = vmatprep.subr.bf16.mxu0 %v1827_v24  ;;  %1956 = vmatprep.subr.bf16.mxu1 %v1955_v25  ;;  %v825_v24 = vld [vmem:[#allocation8 + $0xd48] sm:$0xff]  ;;  %v819_v25 = vld [vmem:[#allocation8 + $0xd18] sm:$0xff]  ;;  %v1861_v21 = vpack.c.bf16 %v872_v8, %v864_v6  ;;  %v430_v6 = vld [vmem:[#allocation8 + $0xf0] sm:$0xff] }
 0x1a0   :  { %v1847_v32 = vpack.c.bf16 %v825_v24, %v817_v23  ;;  %v1975_v35 = vpack.c.bf16 %v827_v26, %v819_v25  ;;  %v880_v23 = vld [vmem:[#allocation8 + $0xf00] sm:$0xff]  ;;  %v437_v8 = vld [vmem:[#allocation8 + $0x128] sm:$0xff] }
 0x1a1   :  { %v888_v24 = vld [vmem:[#allocation8 + $0xf40] sm:$0xff] }
 0x1a2   :  { %1830 = vmatpush1.bf16.msra.mxu0 %v1829_v36  ;;  %1958 = vmatpush1.bf16.msra.mxu1 %v1957_v37  ;;  %v818_v36 = vld [vmem:[#allocation8 + $0xd10] sm:$0xff] }
 0x1a3   :  { %1832 = vmatprep.subr.bf16.mxu0 %v1831_v41  ;;  %1960 = vmatprep.subr.bf16.mxu1 %v1959_v42  ;;  %v826_v37 = vld [vmem:[#allocation8 + $0xd50] sm:$0xff]  ;;  %v843_v41 = vld [vmem:[#allocation8 + $0xdd8] sm:$0xff]  ;;  %v1849_v42 = vpack.c.bf16 %v824_v31, %v816_v30  ;;  %v897_v30 = vld [vmem:[#allocation8 + $0xf88] sm:$0xff] }
 0x1a4   :  { %v1977_v43 = vpack.c.bf16 %v826_v37, %v818_v36  ;;  %v1979_v47 = vpack.c.bf16 %v843_v41, %v835_v40  ;;  %v905_v31 = vld [vmem:[#allocation8 + $0xfc8] sm:$0xff]  ;;  %v1865_v37 = vpack.c.bf16 %v888_v24, %v880_v23  ;;  %v904_v40 = vld [vmem:[#allocation8 + $0xfc0] sm:$0xff]  ;;  %v446_v23 = vld [vmem:[#allocation8 + $0x170] sm:$0xff] }
 0x1a5   :  { %v1867_v41 = vpack.c.bf16 %v905_v31, %v897_v30  ;;  %v453_v24 = vld [vmem:[#allocation8 + $0x1a8] sm:$0xff] }
 0x1a6   :  { %1834 = vmatpush1.bf16.msra.mxu0 %v1833_v51  ;;  %1962 = vmatpush1.bf16.msra.mxu1 %v1961_v52  ;;  %v842_v51 = vld [vmem:[#allocation8 + $0xdd0] sm:$0xff]  ;;  %v849_v52 = vld [vmem:[#allocation8 + $0xe08] sm:$0xff] }
 0x1a7   :  { %1836 = vmatprep.subr.bf16.mxu0 %v1835_v55  ;;  %1964 = vmatprep.subr.bf16.mxu1 %v1963_v56  ;;  %v859_v55 = vld [vmem:[#allocation8 + $0xe58] sm:$0xff]  ;;  %v1853_v56 = vpack.c.bf16 %v840_v45, %v832_v44  ;;  %v1981_v57 = vpack.c.bf16 %v842_v51, %v834_v49  ;;  %v1855_v60 = vpack.c.bf16 %v857_v53, %v849_v52  ;;  %v906_v44 = vld [vmem:[#allocation8 + $0xfd0] sm:$0xff]  ;;  %v405_v45 = vld [vmem:[#allocation8 + $0x28] sm:$0xff] }
 0x1a8   :  { %v1983_v61 = vpack.c.bf16 %v859_v55, %v851_v54  ;;  %v415_v49 = vld [vmem:[#allocation8 + $0x78] sm:$0xff]  ;;  %v404_v55 = vld [vmem:[#allocation8 + $0x20] sm:$0xff] }
 0x1aa   :  { %1838 = vmatpush1.bf16.msra.mxu0 %v1837_v63  ;;  %1966 = vmatpush1.bf16.msra.mxu1 %v1965_v0  ;;  %v858_v63 = vld [vmem:[#allocation8 + $0xe50] sm:$0xff]  ;;  %v865_v0 = vld [vmem:[#allocation8 + $0xe88] sm:$0xff] }
 0x1ab   :  { %1840 = vmatprep.subr.bf16.mxu0 %v1839_v3  ;;  %1968 = vmatprep.subr.bf16.mxu1 %v1967_v4  ;;  %v875_v3 = vld [vmem:[#allocation8 + $0xed8] sm:$0xff]  ;;  %v1857_v4 = vpack.c.bf16 %v856_v59, %v848_v58  ;;  %v1985_v5 = vpack.c.bf16 %v858_v63, %v850_v62  ;;  %v1859_v9 = vpack.c.bf16 %v873_v1, %v865_v0  ;;  %v414_v58 = vld [vmem:[#allocation8 + $0x70] sm:$0xff]  ;;  %v421_v59 = vld [vmem:[#allocation8 + $0xa8] sm:$0xff] }
 0x1ac   :  { %v1987_v10 = vpack.c.bf16 %v875_v3, %v867_v2  ;;  %v423_v62 = vld [vmem:[#allocation8 + $0xb8] sm:$0xff]  ;;  %v420_v1 = vld [vmem:[#allocation8 + $0xa0] sm:$0xff]  ;;  %v422_v3 = vld [vmem:[#allocation8 + $0xb0] sm:$0xff] }
 0x1ad   :  { %v431_v63 = vld [vmem:[#allocation8 + $0xf8] sm:$0xff]  ;;  %v428_v2 = vld [vmem:[#allocation8 + $0xe0] sm:$0xff] }
 0x1ae   :  { %1842 = vmatpush1.bf16.msra.mxu0 %v1841_v15  ;;  %1970 = vmatpush1.bf16.msra.mxu1 %v1969_v16  ;;  %v874_v15 = vld [vmem:[#allocation8 + $0xed0] sm:$0xff]  ;;  %v881_v16 = vld [vmem:[#allocation8 + $0xf08] sm:$0xff] }
 0x1af   :  { %1844 = vmatprep.subr.bf16.mxu0 %v1843_v19  ;;  %1972 = vmatprep.subr.bf16.mxu1 %v1971_v20  ;;  %v891_v19 = vld [vmem:[#allocation8 + $0xf58] sm:$0xff]  ;;  %v2588_v20 = vsub.s32 2, %v2554_v48  ;;  %v1989_v22 = vpack.c.bf16 %v874_v15, %v866_v14  ;;  %v1863_v25 = vpack.c.bf16 %v889_v17, %v881_v16  ;;  %v2005_v15 = vpack.c.bf16 %v428_v2, %v420_v1 }
 0x1b0   :  { %v1991_v26 = vpack.c.bf16 %v891_v19, %v883_v18  ;;  %v447_v14 = vld [vmem:[#allocation8 + $0x178] sm:$0xff]  ;;  %v2133_v16 = vpack.c.bf16 %v430_v6, %v422_v3  ;;  %v436_v18 = vld [vmem:[#allocation8 + $0x120] sm:$0xff] }
 0x1b1   :  { %v245_v36 = vrot.slane %v2559_v12, %v2588_v20  ;;  %v1869_v12 = vpack.c.bf16 %v904_v40, %v896_v39  ;;  %v444_v19 = vld [vmem:[#allocation8 + $0x160] sm:$0xff]  ;;  %v477_v39 = vld [vmem:[#allocation8 + $0x268] sm:$0xff]  ;;  %v471_v40 = vld [vmem:[#allocation8 + $0x238] sm:$0xff] }
 0x1b2   :  { %1846 = vmatpush1.bf16.msra.mxu0 %v1845_v27  ;;  %1974 = vmatpush1.bf16.msra.mxu1 %v1973_v29  ;;  %v882_v27 = vld [vmem:[#allocation8 + $0xf10] sm:$0xff]  ;;  %v503_v1 = vld [vmem:[#allocation8 + $0x338] sm:$0xff]  ;;  %v500_v6 = vld [vmem:[#allocation8 + $0x320] sm:$0xff] }
 0x1b3   :  { %1848 = vmatprep.subr.bf16.mxu0 %v1847_v32  ;;  %1976 = vmatprep.subr.bf16.mxu1 %v1975_v35  ;;  %v890_v29 = vld [vmem:[#allocation8 + $0xf50] sm:$0xff]  ;;  %v899_v32 = vld [vmem:[#allocation8 + $0xf98] sm:$0xff]  ;;  %v392_v51 = vadd.f32 %v2581_v34, %v245_v36 }
 0x1b4   :  { %v907_v35 = vld [vmem:[#allocation8 + $0xfd8] sm:$0xff]  ;;  %v1993_v38 = vpack.c.bf16 %v890_v29, %v882_v27  ;;  %v2009_v29 = vpack.c.bf16 %v444_v19, %v436_v18 }
 0x1b5   :  { %v463_v27 = vld [vmem:[#allocation8 + $0x1f8] sm:$0xff] }
 0x1b6   :  { %1850 = vmatpush1.bf16.msra.mxu0 %v1849_v42  ;;  %1978 = vmatpush1.bf16.msra.mxu1 %v1977_v43  ;;  %v1995_v42 = vpack.c.bf16 %v907_v35, %v899_v32  ;;  %v898_v43 = vld [vmem:[#allocation8 + $0xf90] sm:$0xff]  ;;  %v460_v32 = vld [vmem:[#allocation8 + $0x1e0] sm:$0xff]  ;;  %v511_v2 = vld [vmem:[#allocation8 + $0x378] sm:$0xff] }
 0x1b7   :  { %1852 = vmatprep.subr.bf16.mxu0 %v1851_v46  ;;  %1980 = vmatprep.subr.bf16.mxu1 %v1979_v47  ;;  %v413_v46 = vld [vmem:[#allocation8 + $0x68] sm:$0xff]  ;;  %v407_v47 = vld [vmem:[#allocation8 + $0x38] sm:$0xff]  ;;  %v1997_v52 = vpack.c.bf16 %v906_v44, %v898_v43  ;;  %v454_v35 = vld [vmem:[#allocation8 + $0x1b0] sm:$0xff] }
 0x1b8   :  { %v1999_v53 = vpack.c.bf16 %v413_v46, %v405_v45  ;;  %v2127_v54 = vpack.c.bf16 %v415_v49, %v407_v47  ;;  %v468_v45 = vld [vmem:[#allocation8 + $0x220] sm:$0xff]  ;;  %v470_v47 = vld [vmem:[#allocation8 + $0x230] sm:$0xff]  ;;  %v527_v18 = vld [vmem:[#allocation8 + $0x3f8] sm:$0xff] }
 0x1b9   :  { %v476_v46 = vld [vmem:[#allocation8 + $0x260] sm:$0xff] }
 0x1ba   :  { %1854 = vmatpush1.bf16.msra.mxu0 %v1853_v56  ;;  %1982 = vmatpush1.bf16.msra.mxu1 %v1981_v57  ;;  %v412_v56 = vld [vmem:[#allocation8 + $0x60] sm:$0xff]  ;;  %v406_v57 = vld [vmem:[#allocation8 + $0x30] sm:$0xff] }
 0x1bb   :  { %1856 = vmatprep.subr.bf16.mxu0 %v1855_v60  ;;  %1984 = vmatprep.subr.bf16.mxu1 %v1983_v61  ;;  %v2593_v60 = vmax.f32 %v392_v51, 0.0  ;;  %v429_v61 = vld [vmem:[#allocation8 + $0xe8] sm:$0xff]  ;;  %v2001_v34 = vpack.c.bf16 %v412_v56, %v404_v55  ;;  %v2129_v0 = vpack.c.bf16 %v414_v58, %v406_v57  ;;  %v478_v51 = vld [vmem:[#allocation8 + $0x270] sm:$0xff]  ;;  %v2017_v55 = vpack.c.bf16 %v476_v46, %v468_v45  ;;  %v484_v58 = vld [vmem:[#allocation8 + $0x2a0] sm:$0xff] }
 0x1bc   :  { %v2145_v56 = vpack.c.bf16 %v478_v51, %v470_v47  ;;  %v559_v45 = vld [vmem:[#allocation8 + $0x4f8] sm:$0xff]  ;;  %v548_v51 = vld [vmem:[#allocation8 + $0x4a0] sm:$0xff] }
 0x1be   :  { %1858 = vmatpush1.bf16.msra.mxu0 %v1857_v4  ;;  %1986 = vmatpush1.bf16.msra.mxu1 %v1985_v5  ;;  %v2003_v4 = vpack.c.bf16 %v429_v61, %v421_v59  ;;  %v2131_v5 = vpack.c.bf16 %v431_v63, %v423_v62  ;;  %v492_v59 = vld [vmem:[#allocation8 + $0x2e0] sm:$0xff]  ;;  %v486_v61 = vld [vmem:[#allocation8 + $0x2b0] sm:$0xff] }
 0x1bf   :  { %1860 = vmatprep.subr.bf16.mxu0 %v1859_v9  ;;  %1988 = vmatprep.subr.bf16.mxu1 %v1987_v10  ;;  %v445_v9 = vld [vmem:[#allocation8 + $0x168] sm:$0xff]  ;;  %v439_v10 = vld [vmem:[#allocation8 + $0x138] sm:$0xff]  ;;  %v494_v63 = vld [vmem:[#allocation8 + $0x2f0] sm:$0xff]  ;;  %v2021_v3 = vpack.c.bf16 %v492_v59, %v484_v58 }
 0x1c0   :  { %v2007_v17 = vpack.c.bf16 %v445_v9, %v437_v8  ;;  %v508_v8 = vld [vmem:[#allocation8 + $0x360] sm:$0xff]  ;;  %v502_v9 = vld [vmem:[#allocation8 + $0x330] sm:$0xff]  ;;  %v575_v58 = vld [vmem:[#allocation8 + $0x578] sm:$0xff] }
 0x1c1   :  { %v2025_v19 = vpack.c.bf16 %v508_v8, %v500_v6  ;;  %v591_v6 = vld [vmem:[#allocation8 + $0x5f8] sm:$0xff] }
 0x1c2   :  { %1862 = vmatpush1.bf16.msra.mxu0 %v1861_v21  ;;  %1990 = vmatpush1.bf16.msra.mxu1 %v1989_v22  ;;  %v438_v21 = vld [vmem:[#allocation8 + $0x130] sm:$0xff]  ;;  %v2135_v22 = vpack.c.bf16 %v447_v14, %v439_v10  ;;  %v2151_v10 = vpack.c.bf16 %v511_v2, %v503_v1 }
 0x1c3   :  { %1864 = vmatprep.subr.bf16.mxu0 %v1863_v25  ;;  %1992 = vmatprep.subr.bf16.mxu1 %v1991_v26  ;;  %v461_v25 = vld [vmem:[#allocation8 + $0x1e8] sm:$0xff]  ;;  %v455_v26 = vld [vmem:[#allocation8 + $0x1b8] sm:$0xff]  ;;  %v2137_v30 = vpack.c.bf16 %v446_v23, %v438_v21  ;;  %v510_v14 = vld [vmem:[#allocation8 + $0x370] sm:$0xff] }
 0x1c4   :  { %v2011_v31 = vpack.c.bf16 %v461_v25, %v453_v24  ;;  %v2139_v36 = vpack.c.bf16 %v463_v27, %v455_v26  ;;  %v2153_v21 = vpack.c.bf16 %v510_v14, %v502_v9  ;;  %v516_v23 = vld [vmem:[#allocation8 + $0x3a0] sm:$0xff]  ;;  %v518_v25 = vld [vmem:[#allocation8 + $0x3b0] sm:$0xff] }
 0x1c5   :  { %v524_v24 = vld [vmem:[#allocation8 + $0x3e0] sm:$0xff]  ;;  %v526_v27 = vld [vmem:[#allocation8 + $0x3f0] sm:$0xff] }
 0x1c6   :  { %1866 = vmatpush1.bf16.msra.mxu0 %v1865_v37  ;;  %1994 = vmatpush1.bf16.msra.mxu1 %v1993_v38  ;;  %v462_v37 = vld [vmem:[#allocation8 + $0x1f0] sm:$0xff]  ;;  %v469_v38 = vld [vmem:[#allocation8 + $0x228] sm:$0xff]  ;;  %v580_v14 = vld [vmem:[#allocation8 + $0x5a0] sm:$0xff] }
 0x1c7   :  { %1868 = vmatprep.subr.bf16.mxu0 %v1867_v41  ;;  %1996 = vmatprep.subr.bf16.mxu1 %v1995_v42  ;;  %v479_v41 = vld [vmem:[#allocation8 + $0x278] sm:$0xff]  ;;  %v2141_v43 = vpack.c.bf16 %v462_v37, %v454_v35  ;;  %v2015_v44 = vpack.c.bf16 %v477_v39, %v469_v38  ;;  %v2157_v35 = vpack.c.bf16 %v526_v27, %v518_v25  ;;  %v532_v37 = vld [vmem:[#allocation8 + $0x420] sm:$0xff]  ;;  %v534_v39 = vld [vmem:[#allocation8 + $0x430] sm:$0xff] }
 0x1c8   :  { %v2143_v49 = vpack.c.bf16 %v479_v41, %v471_v40  ;;  %v540_v38 = vld [vmem:[#allocation8 + $0x460] sm:$0xff]  ;;  %v542_v41 = vld [vmem:[#allocation8 + $0x470] sm:$0xff] }
 0x1c9   :  { %v2033_v46 = vpack.c.bf16 %v540_v38, %v532_v37  ;;  %v2161_v47 = vpack.c.bf16 %v542_v41, %v534_v39  ;;  %v574_v2 = vld [vmem:[#allocation8 + $0x570] sm:$0xff]  ;;  %v596_v27 = vld [vmem:[#allocation8 + $0x620] sm:$0xff]  ;;  %v623_v37 = vld [vmem:[#allocation8 + $0x6f8] sm:$0xff] }
 0x1ca   :  { %1870 = vmatpush1.bf16.msra.mxu0 %v1869_v12  ;;  %1998 = vmatpush1.bf16.msra.mxu1 %v1997_v52  ;;  %v485_v12 = vld [vmem:[#allocation8 + $0x2a8] sm:$0xff]  ;;  %v612_v41 = vld [vmem:[#allocation8 + $0x6a0] sm:$0xff] }
 0x1cb   :  { %2000 = vmatprep.subr.bf16.mxu0 %v1999_v53  ;;  %2128 = vmatprep.subr.bf16.mxu1 %v2127_v54  ;;  %v493_v52 = vld [vmem:[#allocation8 + $0x2e8] sm:$0xff]  ;;  %v487_v53 = vld [vmem:[#allocation8 + $0x2b8] sm:$0xff] }
 0x1cc   :  { %v495_v54 = vld [vmem:[#allocation8 + $0x2f8] sm:$0xff]  ;;  %v2019_v57 = vpack.c.bf16 %v493_v52, %v485_v12  ;;  %v556_v12 = vld [vmem:[#allocation8 + $0x4e0] sm:$0xff]  ;;  %v550_v52 = vld [vmem:[#allocation8 + $0x4b0] sm:$0xff] }
 0x1cd   :  { %1090 = vmatmul.mubr.f32.vlgmr.msra.gmra.mrb[2].mxu0 %v2593_v60  ;;  %1232 = vmatmul.mubr.f32.vlgmr.msra.gmra.mrb[2].mxu1 %v2593_v60  ;;  %v2147_v62 = vpack.c.bf16 %v495_v54, %v487_v53  ;;  %v558_v54 = vld [vmem:[#allocation8 + $0x4f0] sm:$0xff]  ;;  %v2037_v59 = vpack.c.bf16 %v556_v12, %v548_v51  ;;  %v639_v51 = vld [vmem:[#allocation8 + $0x778] sm:$0xff] }
 0x1ce   :  { %2002 = vmatpush1.bf16.msra.mxu0 %v2001_v34  ;;  %1302 = vmatprep.mubr.f32.mxu0 %v2568_v28  ;;  %v501_v34 = vld [vmem:[#allocation8 + $0x328] sm:$0xff] }
 0x1cf   :  { %2130 = vmatpush1.bf16.msra.mxu1 %v2129_v0  ;;  %1444 = vmatprep.mubr.f32.mxu1 %v2568_v28  ;;  %v452_v28 = vld [vmem:[#allocation8 + $0x1a0] sm:$0xff]  ;;  %v509_v0 = vld [vmem:[#allocation8 + $0x368] sm:$0xff] }
 0x1d0   :  { %2004 = vmatprep.subr.bf16.mxu0 %v2003_v4  ;;  %2132 = vmatprep.subr.bf16.mxu1 %v2131_v5  ;;  %v2013_v42 = vpack.c.bf16 %v460_v32, %v452_v28  ;;  %v2149_v4 = vpack.c.bf16 %v494_v63, %v486_v61  ;;  %v2023_v5 = vpack.c.bf16 %v509_v0, %v501_v34  ;;  %v543_v28 = vld [vmem:[#allocation8 + $0x478] sm:$0xff]  ;;  %v564_v63 = vld [vmem:[#allocation8 + $0x520] sm:$0xff]  ;;  %v566_v0 = vld [vmem:[#allocation8 + $0x530] sm:$0xff] }
 0x1d1   :  { %v2029_v32 = vpack.c.bf16 %v524_v24, %v516_v23  ;;  %v2165_v61 = vpack.c.bf16 %v558_v54, %v550_v52  ;;  %v572_v34 = vld [vmem:[#allocation8 + $0x560] sm:$0xff]  ;;  %v2169_v9 = vpack.c.bf16 %v574_v2, %v566_v0  ;;  %v607_v23 = vld [vmem:[#allocation8 + $0x678] sm:$0xff] }
 0x1d2   :  { %2006 = vmatpush1.bf16.msra.mxu0 %v2005_v15  ;;  %v517_v15 = vld [vmem:[#allocation8 + $0x3a8] sm:$0xff]  ;;  %v2041_v8 = vpack.c.bf16 %v572_v34, %v564_v63  ;;  %v628_v54 = vld [vmem:[#allocation8 + $0x720] sm:$0xff]  ;;  %v655_v63 = vld [vmem:[#allocation8 + $0x7f8] sm:$0xff] }
 0x1d3   :  { %2134 = vmatpush1.bf16.msra.mxu1 %v2133_v16  ;;  %2008 = vmatprep.subr.bf16.mxu0 %v2007_v17  ;;  %v525_v16 = vld [vmem:[#allocation8 + $0x3e8] sm:$0xff]  ;;  %v519_v17 = vld [vmem:[#allocation8 + $0x3b8] sm:$0xff]  ;;  %v644_v2 = vld [vmem:[#allocation8 + $0x7a0] sm:$0xff] }
 0x1d4   :  { %2136 = vmatprep.subr.bf16.mxu1 %v2135_v22  ;;  %v2027_v22 = vpack.c.bf16 %v525_v16, %v517_v15  ;;  %v2155_v26 = vpack.c.bf16 %v527_v18, %v519_v17  ;;  %v588_v15 = vld [vmem:[#allocation8 + $0x5e0] sm:$0xff]  ;;  %v582_v16 = vld [vmem:[#allocation8 + $0x5b0] sm:$0xff] }
 0x1d5   :  { %v590_v18 = vld [vmem:[#allocation8 + $0x5f0] sm:$0xff]  ;;  %v2045_v24 = vpack.c.bf16 %v588_v15, %v580_v14  ;;  %v671_v14 = vld [vmem:[#allocation8 + $0x878] sm:$0xff] }
 0x1d6   :  { %2010 = vmatpush1.bf16.msra.mxu0 %v2009_v29  ;;  %v533_v29 = vld [vmem:[#allocation8 + $0x428] sm:$0xff]  ;;  %v2173_v25 = vpack.c.bf16 %v590_v18, %v582_v16  ;;  %v660_v18 = vld [vmem:[#allocation8 + $0x820] sm:$0xff] }
 0x1d7   :  { %2138 = vmatpush1.bf16.msra.mxu1 %v2137_v30  ;;  %2012 = vmatprep.subr.bf16.mxu0 %v2011_v31  ;;  %v541_v30 = vld [vmem:[#allocation8 + $0x468] sm:$0xff]  ;;  %v535_v31 = vld [vmem:[#allocation8 + $0x438] sm:$0xff] }
 0x1d8   :  { %2140 = vmatprep.subr.bf16.mxu1 %v2139_v36  ;;  %v2031_v36 = vpack.c.bf16 %v541_v30, %v533_v29  ;;  %v2159_v40 = vpack.c.bf16 %v543_v28, %v535_v31  ;;  %v604_v29 = vld [vmem:[#allocation8 + $0x660] sm:$0xff]  ;;  %v598_v30 = vld [vmem:[#allocation8 + $0x630] sm:$0xff] }
 0x1d9   :  { %v606_v28 = vld [vmem:[#allocation8 + $0x670] sm:$0xff]  ;;  %v2049_v38 = vpack.c.bf16 %v604_v29, %v596_v27  ;;  %v679_v27 = vld [vmem:[#allocation8 + $0x8b8] sm:$0xff] }
 0x1da   :  { %2014 = vmatpush1.bf16.msra.mxu0 %v2013_v42  ;;  %v549_v42 = vld [vmem:[#allocation8 + $0x4a8] sm:$0xff]  ;;  %v2177_v39 = vpack.c.bf16 %v606_v28, %v598_v30  ;;  %v687_v29 = vld [vmem:[#allocation8 + $0x8f8] sm:$0xff]  ;;  %v684_v28 = vld [vmem:[#allocation8 + $0x8e0] sm:$0xff] }
 0x1db   :  { %2142 = vmatpush1.bf16.msra.mxu1 %v2141_v43  ;;  %2016 = vmatprep.subr.bf16.mxu0 %v2015_v44  ;;  %v557_v43 = vld [vmem:[#allocation8 + $0x4e8] sm:$0xff]  ;;  %v551_v44 = vld [vmem:[#allocation8 + $0x4b8] sm:$0xff] }
 0x1dc   :  { %2144 = vmatprep.subr.bf16.mxu1 %v2143_v49  ;;  %v2035_v49 = vpack.c.bf16 %v557_v43, %v549_v42  ;;  %v2163_v53 = vpack.c.bf16 %v559_v45, %v551_v44  ;;  %v620_v42 = vld [vmem:[#allocation8 + $0x6e0] sm:$0xff]  ;;  %v614_v43 = vld [vmem:[#allocation8 + $0x6b0] sm:$0xff] }
 0x1dd   :  { %v622_v45 = vld [vmem:[#allocation8 + $0x6f0] sm:$0xff]  ;;  %v2053_v12 = vpack.c.bf16 %v620_v42, %v612_v41  ;;  %v703_v41 = vld [vmem:[#allocation8 + $0x978] sm:$0xff] }
 0x1de   :  { %2018 = vmatpush1.bf16.msra.mxu0 %v2017_v55  ;;  %v565_v55 = vld [vmem:[#allocation8 + $0x528] sm:$0xff]  ;;  %v2181_v52 = vpack.c.bf16 %v622_v45, %v614_v43  ;;  %v692_v45 = vld [vmem:[#allocation8 + $0x920] sm:$0xff] }
 0x1df   :  { %2146 = vmatpush1.bf16.msra.mxu1 %v2145_v56  ;;  %2020 = vmatprep.subr.bf16.mxu0 %v2019_v57  ;;  %v573_v56 = vld [vmem:[#allocation8 + $0x568] sm:$0xff]  ;;  %v567_v57 = vld [vmem:[#allocation8 + $0x538] sm:$0xff] }
 0x1e0   :  { %2148 = vmatprep.subr.bf16.mxu1 %v2147_v62  ;;  %v2039_v62 = vpack.c.bf16 %v573_v56, %v565_v55  ;;  %v2167_v1 = vpack.c.bf16 %v575_v58, %v567_v57  ;;  %v636_v55 = vld [vmem:[#allocation8 + $0x760] sm:$0xff]  ;;  %v630_v56 = vld [vmem:[#allocation8 + $0x730] sm:$0xff] }
 0x1e1   :  { %v638_v58 = vld [vmem:[#allocation8 + $0x770] sm:$0xff]  ;;  %v2057_v34 = vpack.c.bf16 %v636_v55, %v628_v54 }
 0x1e2   :  { %2022 = vmatpush1.bf16.msra.mxu0 %v2021_v3  ;;  %v581_v3 = vld [vmem:[#allocation8 + $0x5a8] sm:$0xff]  ;;  %v2185_v0 = vpack.c.bf16 %v638_v58, %v630_v56  ;;  %v716_v58 = vld [vmem:[#allocation8 + $0x9e0] sm:$0xff] }
 0x1e3   :  { %2150 = vmatpush1.bf16.msra.mxu1 %v2149_v4  ;;  %2024 = vmatprep.subr.bf16.mxu0 %v2023_v5  ;;  %v589_v4 = vld [vmem:[#allocation8 + $0x5e8] sm:$0xff]  ;;  %v583_v5 = vld [vmem:[#allocation8 + $0x5b8] sm:$0xff] }
 0x1e4   :  { %2152 = vmatprep.subr.bf16.mxu1 %v2151_v10  ;;  %v2043_v10 = vpack.c.bf16 %v589_v4, %v581_v3  ;;  %v2171_v17 = vpack.c.bf16 %v591_v6, %v583_v5  ;;  %v652_v3 = vld [vmem:[#allocation8 + $0x7e0] sm:$0xff]  ;;  %v646_v4 = vld [vmem:[#allocation8 + $0x7b0] sm:$0xff] }
 0x1e5   :  { %v654_v6 = vld [vmem:[#allocation8 + $0x7f0] sm:$0xff]  ;;  %v2061_v15 = vpack.c.bf16 %v652_v3, %v644_v2 }
 0x1e6   :  { %2026 = vmatpush1.bf16.msra.mxu0 %v2025_v19  ;;  %v597_v19 = vld [vmem:[#allocation8 + $0x628] sm:$0xff]  ;;  %v2189_v16 = vpack.c.bf16 %v654_v6, %v646_v4  ;;  %v724_v4 = vld [vmem:[#allocation8 + $0xa20] sm:$0xff]  ;;  %v726_v6 = vld [vmem:[#allocation8 + $0xa30] sm:$0xff] }
 0x1e7   :  { %2154 = vmatpush1.bf16.msra.mxu1 %v2153_v21  ;;  %2028 = vmatprep.subr.bf16.mxu0 %v2027_v22  ;;  %v605_v21 = vld [vmem:[#allocation8 + $0x668] sm:$0xff]  ;;  %v599_v22 = vld [vmem:[#allocation8 + $0x638] sm:$0xff] }
 0x1e8   :  { %2156 = vmatprep.subr.bf16.mxu1 %v2155_v26  ;;  %v2047_v26 = vpack.c.bf16 %v605_v21, %v597_v19  ;;  %v2175_v31 = vpack.c.bf16 %v607_v23, %v599_v22  ;;  %v668_v19 = vld [vmem:[#allocation8 + $0x860] sm:$0xff]  ;;  %v662_v22 = vld [vmem:[#allocation8 + $0x830] sm:$0xff] }
 0x1e9   :  { %v670_v23 = vld [vmem:[#allocation8 + $0x870] sm:$0xff] }
 0x1ea   :  { %2030 = vmatpush1.bf16.msra.mxu0 %v2029_v32  ;;  %v613_v32 = vld [vmem:[#allocation8 + $0x6a8] sm:$0xff]  ;;  %v2193_v30 = vpack.c.bf16 %v670_v23, %v662_v22  ;;  %v748_v22 = vld [vmem:[#allocation8 + $0xae0] sm:$0xff]  ;;  %v742_v23 = vld [vmem:[#allocation8 + $0xab0] sm:$0xff] }
 0x1eb   :  { %2158 = vmatpush1.bf16.msra.mxu1 %v2157_v35  ;;  %2032 = vmatprep.subr.bf16.mxu0 %v2031_v36  ;;  %v621_v35 = vld [vmem:[#allocation8 + $0x6e8] sm:$0xff]  ;;  %v615_v36 = vld [vmem:[#allocation8 + $0x6b8] sm:$0xff] }
 0x1ec   :  { %2160 = vmatprep.subr.bf16.mxu1 %v2159_v40  ;;  %v2051_v40 = vpack.c.bf16 %v621_v35, %v613_v32  ;;  %v2179_v44 = vpack.c.bf16 %v623_v37, %v615_v36  ;;  %v678_v32 = vld [vmem:[#allocation8 + $0x8b0] sm:$0xff]  ;;  %v693_v37 = vld [vmem:[#allocation8 + $0x928] sm:$0xff] }
 0x1ed   :  { %v686_v36 = vld [vmem:[#allocation8 + $0x8f0] sm:$0xff] }
 0x1ee   :  { %2034 = vmatpush1.bf16.msra.mxu0 %v2033_v46  ;;  %v629_v46 = vld [vmem:[#allocation8 + $0x728] sm:$0xff]  ;;  %v2197_v43 = vpack.c.bf16 %v686_v36, %v678_v32  ;;  %v764_v36 = vld [vmem:[#allocation8 + $0xb60] sm:$0xff] }
 0x1ef   :  { %2162 = vmatpush1.bf16.msra.mxu1 %v2161_v47  ;;  %2036 = vmatprep.subr.bf16.mxu0 %v2035_v49  ;;  %v637_v47 = vld [vmem:[#allocation8 + $0x768] sm:$0xff]  ;;  %v631_v49 = vld [vmem:[#allocation8 + $0x738] sm:$0xff] }
 0x1f0   :  { %2164 = vmatprep.subr.bf16.mxu1 %v2163_v53  ;;  %v2055_v53 = vpack.c.bf16 %v637_v47, %v629_v46  ;;  %v2183_v57 = vpack.c.bf16 %v639_v51, %v631_v49  ;;  %v700_v46 = vld [vmem:[#allocation8 + $0x960] sm:$0xff]  ;;  %v694_v47 = vld [vmem:[#allocation8 + $0x930] sm:$0xff] }
 0x1f1   :  { %v702_v51 = vld [vmem:[#allocation8 + $0x970] sm:$0xff]  ;;  %v2073_v54 = vpack.c.bf16 %v700_v46, %v692_v45 }
 0x1f2   :  { %2038 = vmatpush1.bf16.msra.mxu0 %v2037_v59  ;;  %v645_v59 = vld [vmem:[#allocation8 + $0x7a8] sm:$0xff]  ;;  %v2201_v55 = vpack.c.bf16 %v702_v51, %v694_v47  ;;  %v772_v47 = vld [vmem:[#allocation8 + $0xba0] sm:$0xff]  ;;  %v774_v51 = vld [vmem:[#allocation8 + $0xbb0] sm:$0xff] }
 0x1f3   :  { %2166 = vmatpush1.bf16.msra.mxu1 %v2165_v61  ;;  %2040 = vmatprep.subr.bf16.mxu0 %v2039_v62  ;;  %v653_v61 = vld [vmem:[#allocation8 + $0x7e8] sm:$0xff]  ;;  %v647_v62 = vld [vmem:[#allocation8 + $0x7b8] sm:$0xff] }
 0x1f4   :  { %2168 = vmatprep.subr.bf16.mxu1 %v2167_v1  ;;  %v2059_v1 = vpack.c.bf16 %v653_v61, %v645_v59  ;;  %v2187_v5 = vpack.c.bf16 %v655_v63, %v647_v62  ;;  %v710_v59 = vld [vmem:[#allocation8 + $0x9b0] sm:$0xff]  ;;  %v725_v62 = vld [vmem:[#allocation8 + $0xa28] sm:$0xff] }
 0x1f5   :  { %v733_v63 = vld [vmem:[#allocation8 + $0xa68] sm:$0xff] }
 0x1f6   :  { %2042 = vmatpush1.bf16.msra.mxu0 %v2041_v8  ;;  %v661_v8 = vld [vmem:[#allocation8 + $0x828] sm:$0xff]  ;;  %v2079_v3 = vpack.c.bf16 %v733_v63, %v725_v62  ;;  %v798_v63 = vld [vmem:[#allocation8 + $0xc70] sm:$0xff] }
 0x1f7   :  { %2170 = vmatpush1.bf16.msra.mxu1 %v2169_v9  ;;  %2044 = vmatprep.subr.bf16.mxu0 %v2043_v10  ;;  %v669_v9 = vld [vmem:[#allocation8 + $0x868] sm:$0xff]  ;;  %v663_v10 = vld [vmem:[#allocation8 + $0x838] sm:$0xff] }
 0x1f8   :  { %2172 = vmatprep.subr.bf16.mxu1 %v2171_v17  ;;  %v2063_v17 = vpack.c.bf16 %v669_v9, %v661_v8  ;;  %v2191_v21 = vpack.c.bf16 %v671_v14, %v663_v10  ;;  %v734_v9 = vld [vmem:[#allocation8 + $0xa70] sm:$0xff]  ;;  %v741_v10 = vld [vmem:[#allocation8 + $0xaa8] sm:$0xff] }
 0x1f9   :  { %v749_v14 = vld [vmem:[#allocation8 + $0xae8] sm:$0xff] }
 0x1fa   :  { %2046 = vmatpush1.bf16.msra.mxu0 %v2045_v24  ;;  %v677_v24 = vld [vmem:[#allocation8 + $0x8a8] sm:$0xff] }
 0x1fb   :  { %2174 = vmatpush1.bf16.msra.mxu1 %v2173_v25  ;;  %2048 = vmatprep.subr.bf16.mxu0 %v2047_v26  ;;  %v685_v25 = vld [vmem:[#allocation8 + $0x8e8] sm:$0xff]  ;;  %v2065_v26 = vpack.c.bf16 %v668_v19, %v660_v18  ;;  %v2209_v18 = vpack.c.bf16 %v734_v9, %v726_v6  ;;  %v2083_v19 = vpack.c.bf16 %v749_v14, %v741_v10  ;;  %v804_v6 = vld [vmem:[#allocation8 + $0xca0] sm:$0xff]  ;;  %v806_v9 = vld [vmem:[#allocation8 + $0xcb0] sm:$0xff] }
 0x1fc   :  { %2176 = vmatprep.subr.bf16.mxu1 %v2175_v31  ;;  %v676_v31 = vld [vmem:[#allocation8 + $0x8a0] sm:$0xff]  ;;  %v2067_v35 = vpack.c.bf16 %v685_v25, %v677_v24  ;;  %v750_v25 = vld [vmem:[#allocation8 + $0xaf0] sm:$0xff] }
 0x1fd   :  { %v2069_v42 = vpack.c.bf16 %v684_v28, %v676_v31  ;;  %v2213_v28 = vpack.c.bf16 %v750_v25, %v742_v23  ;;  %v814_v14 = vld [vmem:[#allocation8 + $0xcf0] sm:$0xff]  ;;  %v820_v23 = vld [vmem:[#allocation8 + $0xd20] sm:$0xff] }
 0x1fe   :  { %2050 = vmatpush1.bf16.msra.mxu0 %v2049_v38  ;;  %v701_v38 = vld [vmem:[#allocation8 + $0x968] sm:$0xff]  ;;  %v822_v25 = vld [vmem:[#allocation8 + $0xd30] sm:$0xff] }
 0x1ff   :  { %2178 = vmatpush1.bf16.msra.mxu1 %v2177_v39  ;;  %2052 = vmatprep.subr.bf16.mxu0 %v2051_v40  ;;  %v2195_v39 = vpack.c.bf16 %v687_v29, %v679_v27  ;;  %v695_v40 = vld [vmem:[#allocation8 + $0x938] sm:$0xff]  ;;  %v765_v27 = vld [vmem:[#allocation8 + $0xb68] sm:$0xff] }
 0x200   :  { %2180 = vmatprep.subr.bf16.mxu1 %v2179_v44  ;;  %v2071_v44 = vpack.c.bf16 %v701_v38, %v693_v37  ;;  %v2199_v49 = vpack.c.bf16 %v703_v41, %v695_v40  ;;  %v759_v29 = vld [vmem:[#allocation8 + $0xb38] sm:$0xff]  ;;  %v758_v37 = vld [vmem:[#allocation8 + $0xb30] sm:$0xff]  ;;  %v773_v40 = vld [vmem:[#allocation8 + $0xba8] sm:$0xff] }
 0x201   :  { %v781_v41 = vld [vmem:[#allocation8 + $0xbe8] sm:$0xff] }
 0x202   :  { %2054 = vmatpush1.bf16.msra.mxu0 %v2053_v12  ;;  %v709_v12 = vld [vmem:[#allocation8 + $0x9a8] sm:$0xff]  ;;  %v2091_v46 = vpack.c.bf16 %v781_v41, %v773_v40  ;;  %v846_v41 = vld [vmem:[#allocation8 + $0xdf0] sm:$0xff] }
 0x203   :  { %2182 = vmatpush1.bf16.msra.mxu1 %v2181_v52  ;;  %2056 = vmatprep.subr.bf16.mxu0 %v2055_v53  ;;  %v717_v52 = vld [vmem:[#allocation8 + $0x9e8] sm:$0xff]  ;;  %v711_v53 = vld [vmem:[#allocation8 + $0x9b8] sm:$0xff] }
 0x204   :  { %2184 = vmatprep.subr.bf16.mxu1 %v2183_v57  ;;  %v2075_v56 = vpack.c.bf16 %v717_v52, %v709_v12  ;;  %v708_v57 = vld [vmem:[#allocation8 + $0x9a0] sm:$0xff]  ;;  %v782_v52 = vld [vmem:[#allocation8 + $0xbf0] sm:$0xff] }
 0x206   :  { %2058 = vmatpush1.bf16.msra.mxu0 %v2057_v34  ;;  %v727_v34 = vld [vmem:[#allocation8 + $0xa38] sm:$0xff] }
 0x207   :  { %2186 = vmatpush1.bf16.msra.mxu1 %v2185_v0  ;;  %2060 = vmatprep.subr.bf16.mxu0 %v2059_v1  ;;  %v735_v0 = vld [vmem:[#allocation8 + $0xa78] sm:$0xff]  ;;  %v2077_v1 = vpack.c.bf16 %v716_v58, %v708_v57  ;;  %v2221_v57 = vpack.c.bf16 %v782_v52, %v774_v51  ;;  %v852_v51 = vld [vmem:[#allocation8 + $0xe20] sm:$0xff]  ;;  %v854_v52 = vld [vmem:[#allocation8 + $0xe30] sm:$0xff] }
 0x208   :  { %2188 = vmatprep.subr.bf16.mxu1 %v2187_v5  ;;  %v732_v5 = vld [vmem:[#allocation8 + $0xa60] sm:$0xff]  ;;  %v2207_v8 = vpack.c.bf16 %v735_v0, %v727_v34  ;;  %v805_v34 = vld [vmem:[#allocation8 + $0xca8] sm:$0xff] }
 0x209   :  { %v813_v0 = vld [vmem:[#allocation8 + $0xce8] sm:$0xff] }
 0x20a   :  { %2062 = vmatpush1.bf16.msra.mxu0 %v2061_v15  ;;  %v743_v15 = vld [vmem:[#allocation8 + $0xab8] sm:$0xff] }
 0x20b   :  { %2190 = vmatpush1.bf16.msra.mxu1 %v2189_v16  ;;  %2064 = vmatprep.subr.bf16.mxu0 %v2063_v17  ;;  %v751_v16 = vld [vmem:[#allocation8 + $0xaf8] sm:$0xff]  ;;  %v2081_v17 = vpack.c.bf16 %v732_v5, %v724_v4  ;;  %v2099_v5 = vpack.c.bf16 %v813_v0, %v805_v34  ;;  %v878_v0 = vld [vmem:[#allocation8 + $0xef0] sm:$0xff] }
 0x20c   :  { %2192 = vmatprep.subr.bf16.mxu1 %v2191_v21  ;;  %v740_v21 = vld [vmem:[#allocation8 + $0xaa0] sm:$0xff]  ;;  %v2211_v24 = vpack.c.bf16 %v751_v16, %v743_v15  ;;  %v821_v15 = vld [vmem:[#allocation8 + $0xd28] sm:$0xff] }
 0x20d   :  { %1303 = vmatmul.mubr.f32.vlgmr.msra.gmra.mrb[4].mxu0 %v2570_v33  ;;  %v2085_v31 = vpack.c.bf16 %v748_v22, %v740_v21  ;;  %v829_v16 = vld [vmem:[#allocation8 + $0xd68] sm:$0xff]  ;;  %v2229_v21 = vpack.c.bf16 %v814_v14, %v806_v9  ;;  %v884_v9 = vld [vmem:[#allocation8 + $0xf20] sm:$0xff]  ;;  %v886_v14 = vld [vmem:[#allocation8 + $0xf30] sm:$0xff] }
 0x20e   :  { %1445 = vmatmul.mubr.f32.vlgmr.msra.gmra.mrb[4].mxu1 %v2570_v33  ;;  %2066 = vmatpush1.bf16.msra.mxu0 %v2065_v26  ;;  %v719_v33 = vld [vmem:[#allocation8 + $0x9f8] sm:$0xff]  ;;  %v757_v26 = vld [vmem:[#allocation8 + $0xb28] sm:$0xff]  ;;  %v2103_v22 = vpack.c.bf16 %v829_v16, %v821_v15  ;;  %v894_v16 = vld [vmem:[#allocation8 + $0xf70] sm:$0xff] }
 0x20f   :  { %1373 = vmatprep.mubr.f32.mxu0 %v2583_v50  ;;  %2194 = vmatpush1.bf16.msra.mxu1 %v2193_v30  ;;  %v2203_v61 = vpack.c.bf16 %v719_v33, %v711_v53  ;;  %v767_v30 = vld [vmem:[#allocation8 + $0xb78] sm:$0xff]  ;;  %v2087_v32 = vpack.c.bf16 %v765_v27, %v757_v26  ;;  %v789_v53 = vld [vmem:[#allocation8 + $0xc28] sm:$0xff]  ;;  %v830_v27 = vld [vmem:[#allocation8 + $0xd70] sm:$0xff] }
 0x210   :  { %1515 = vmatprep.mubr.f32.mxu1 %v2583_v50  ;;  %2068 = vmatprep.subr.bf16.mxu0 %v2067_v35  ;;  %v718_v50 = vld [vmem:[#allocation8 + $0x9f0] sm:$0xff]  ;;  %v756_v35 = vld [vmem:[#allocation8 + $0xb20] sm:$0xff]  ;;  %v2215_v38 = vpack.c.bf16 %v767_v30, %v759_v29  ;;  %v797_v33 = vld [vmem:[#allocation8 + $0xc68] sm:$0xff] }
 0x211   :  { %2196 = vmatprep.subr.bf16.mxu1 %v2195_v39  ;;  %v2205_v2 = vpack.c.bf16 %v718_v50, %v710_v59  ;;  %v766_v39 = vld [vmem:[#allocation8 + $0xb70] sm:$0xff]  ;;  %v2095_v58 = vpack.c.bf16 %v797_v33, %v789_v53  ;;  %v788_v59 = vld [vmem:[#allocation8 + $0xc20] sm:$0xff]  ;;  %v837_v29 = vld [vmem:[#allocation8 + $0xda8] sm:$0xff] }
 0x212   :  { %2070 = vmatpush1.bf16.msra.mxu0 %v2069_v42  ;;  %v775_v42 = vld [vmem:[#allocation8 + $0xbb8] sm:$0xff]  ;;  %v2217_v45 = vpack.c.bf16 %v766_v39, %v758_v37  ;;  %v790_v50 = vld [vmem:[#allocation8 + $0xc30] sm:$0xff]  ;;  %v845_v30 = vld [vmem:[#allocation8 + $0xde8] sm:$0xff] }
 0x213   :  { %2198 = vmatpush1.bf16.msra.mxu1 %v2197_v43  ;;  %2072 = vmatprep.subr.bf16.mxu0 %v2071_v44  ;;  %v783_v43 = vld [vmem:[#allocation8 + $0xbf8] sm:$0xff]  ;;  %v2089_v44 = vpack.c.bf16 %v764_v36, %v756_v35  ;;  %v2225_v4 = vpack.c.bf16 %v798_v63, %v790_v50  ;;  %v2233_v35 = vpack.c.bf16 %v830_v27, %v822_v25  ;;  %v836_v37 = vld [vmem:[#allocation8 + $0xda0] sm:$0xff]  ;;  %v838_v39 = vld [vmem:[#allocation8 + $0xdb0] sm:$0xff] }
 0x214   :  { %2200 = vmatprep.subr.bf16.mxu1 %v2199_v49  ;;  %v780_v49 = vld [vmem:[#allocation8 + $0xbe0] sm:$0xff]  ;;  %v2219_v12 = vpack.c.bf16 %v783_v43, %v775_v42  ;;  %v2107_v36 = vpack.c.bf16 %v845_v30, %v837_v29  ;;  %v853_v42 = vld [vmem:[#allocation8 + $0xe28] sm:$0xff]  ;;  %v862_v33 = vld [vmem:[#allocation8 + $0xe70] sm:$0xff] }
 0x215   :  { %v861_v43 = vld [vmem:[#allocation8 + $0xe68] sm:$0xff]  ;;  %v868_v50 = vld [vmem:[#allocation8 + $0xea0] sm:$0xff]  ;;  %v870_v63 = vld [vmem:[#allocation8 + $0xeb0] sm:$0xff] }
 0x216   :  { %2074 = vmatpush1.bf16.msra.mxu0 %v2073_v54  ;;  %v791_v54 = vld [vmem:[#allocation8 + $0xc38] sm:$0xff]  ;;  %v900_v25 = vld [vmem:[#allocation8 + $0xfa0] sm:$0xff]  ;;  %v902_v29 = vld [vmem:[#allocation8 + $0xfb0] sm:$0xff] }
 0x217   :  { %2202 = vmatpush1.bf16.msra.mxu1 %v2201_v55  ;;  %2076 = vmatprep.subr.bf16.mxu0 %v2075_v56  ;;  %v799_v55 = vld [vmem:[#allocation8 + $0xc78] sm:$0xff]  ;;  %v2093_v56 = vpack.c.bf16 %v780_v49, %v772_v47  ;;  %v2237_v47 = vpack.c.bf16 %v846_v41, %v838_v39  ;;  %v2111_v49 = vpack.c.bf16 %v861_v43, %v853_v42  ;;  %v910_v30 = vld [vmem:[#allocation8 + $0xff0] sm:$0xff] }
 0x218   :  { %2204 = vmatprep.subr.bf16.mxu1 %v2203_v61  ;;  %v796_v61 = vld [vmem:[#allocation8 + $0xc60] sm:$0xff]  ;;  %v2223_v62 = vpack.c.bf16 %v799_v55, %v791_v54  ;;  %v869_v54 = vld [vmem:[#allocation8 + $0xea8] sm:$0xff] }
 0x219   :  { %v877_v55 = vld [vmem:[#allocation8 + $0xee8] sm:$0xff] }
 0x21a   :  { %2078 = vmatpush1.bf16.msra.mxu0 %v2077_v1  ;;  %v807_v1 = vld [vmem:[#allocation8 + $0xcb8] sm:$0xff] }
 0x21b   :  { %2206 = vmatpush1.bf16.msra.mxu1 %v2205_v2  ;;  %2080 = vmatprep.subr.bf16.mxu0 %v2079_v3  ;;  %v815_v2 = vld [vmem:[#allocation8 + $0xcf8] sm:$0xff]  ;;  %v2097_v3 = vpack.c.bf16 %v796_v61, %v788_v59  ;;  %v2241_v59 = vpack.c.bf16 %v862_v33, %v854_v52  ;;  %v2115_v61 = vpack.c.bf16 %v877_v55, %v869_v54 }
 0x21c   :  { %2208 = vmatprep.subr.bf16.mxu1 %v2207_v8  ;;  %v812_v8 = vld [vmem:[#allocation8 + $0xce0] sm:$0xff]  ;;  %v2227_v10 = vpack.c.bf16 %v815_v2, %v807_v1  ;;  %v885_v1 = vld [vmem:[#allocation8 + $0xf28] sm:$0xff] }
 0x21d   :  { %v893_v2 = vld [vmem:[#allocation8 + $0xf68] sm:$0xff] }
 0x21e   :  { %2082 = vmatpush1.bf16.msra.mxu0 %v2081_v17  ;;  %v823_v17 = vld [vmem:[#allocation8 + $0xd38] sm:$0xff] }
 0x21f   :  { %2210 = vmatpush1.bf16.msra.mxu1 %v2209_v18  ;;  %2084 = vmatprep.subr.bf16.mxu0 %v2083_v19  ;;  %v831_v18 = vld [vmem:[#allocation8 + $0xd78] sm:$0xff]  ;;  %v2101_v19 = vpack.c.bf16 %v812_v8, %v804_v6  ;;  %v2245_v6 = vpack.c.bf16 %v878_v0, %v870_v63  ;;  %v2119_v8 = vpack.c.bf16 %v893_v2, %v885_v1  ;;  %v944_v63 = vsub.s32 7, %v2554_v48 }
 0x220   :  { %2212 = vmatprep.subr.bf16.mxu1 %v2211_v24  ;;  %v828_v24 = vld [vmem:[#allocation8 + $0xd60] sm:$0xff]  ;;  %v2231_v26 = vpack.c.bf16 %v831_v18, %v823_v17  ;;  %v901_v17 = vld [vmem:[#allocation8 + $0xfa8] sm:$0xff] }
 0x221   :  { %v909_v18 = vld [vmem:[#allocation8 + $0xfe8] sm:$0xff] }
 0x222   :  { %2086 = vmatpush1.bf16.msra.mxu0 %v2085_v31  ;;  %v839_v31 = vld [vmem:[#allocation8 + $0xdb8] sm:$0xff] }
 0x223   :  { %2214 = vmatpush1.bf16.msra.mxu1 %v2213_v28  ;;  %2088 = vmatprep.subr.bf16.mxu0 %v2087_v32  ;;  %v847_v28 = vld [vmem:[#allocation8 + $0xdf8] sm:$0xff]  ;;  %v2105_v32 = vpack.c.bf16 %v828_v24, %v820_v23  ;;  %v2249_v23 = vpack.c.bf16 %v894_v16, %v886_v14  ;;  %v2123_v24 = vpack.c.bf16 %v909_v18, %v901_v17 }
 0x224   :  { %2216 = vmatprep.subr.bf16.mxu1 %v2215_v38  ;;  %v844_v38 = vld [vmem:[#allocation8 + $0xde0] sm:$0xff]  ;;  %v2235_v40 = vpack.c.bf16 %v847_v28, %v839_v31  ;;  %v2253_v28 = vpack.c.bf16 %v910_v30, %v902_v29  ;;  %v1613_v30 = vld [vmem:[#allocation2] ss:$0 sm:$0xff] }
 0x226   :  { %2090 = vmatpush1.bf16.msra.mxu0 %v2089_v44  ;;  %v855_v44 = vld [vmem:[#allocation8 + $0xe38] sm:$0xff] }
 0x227   :  { %2218 = vmatpush1.bf16.msra.mxu1 %v2217_v45  ;;  %2092 = vmatprep.subr.bf16.mxu0 %v2091_v46  ;;  %v863_v45 = vld [vmem:[#allocation8 + $0xe78] sm:$0xff]  ;;  %v2109_v46 = vpack.c.bf16 %v844_v38, %v836_v37  ;;  %v1530_v37 = vld [vmem:[#allocation11] sm:$0xff] }
 0x228   :  { %2220 = vmatprep.subr.bf16.mxu1 %v2219_v12  ;;  %v860_v12 = vld [vmem:[#allocation8 + $0xe60] sm:$0xff]  ;;  %v2239_v53 = vpack.c.bf16 %v863_v45, %v855_v44  ;;  %v1535_v43 = vrot.slane %v1530_v37, %v2557_v11  ;;  %v1543_v52 = vrot.slane %v1530_v37, %v2588_v20 }
 0x22a   :  { %2094 = vmatpush1.bf16.msra.mxu0 %v2093_v56  ;;  %v871_v56 = vld [vmem:[#allocation8 + $0xeb8] sm:$0xff] }
 0x22b   :  { %2222 = vmatpush1.bf16.msra.mxu1 %v2221_v57  ;;  %2096 = vmatprep.subr.bf16.mxu0 %v2095_v58  ;;  %v879_v57 = vld [vmem:[#allocation8 + $0xef8] sm:$0xff]  ;;  %v2113_v58 = vpack.c.bf16 %v860_v12, %v852_v51 }
 0x22c   :  { %2224 = vmatprep.subr.bf16.mxu1 %v2223_v62  ;;  %v876_v62 = vld [vmem:[#allocation8 + $0xee0] sm:$0xff]  ;;  %v2243_v34 = vpack.c.bf16 %v879_v57, %v871_v56  ;;  %v1547_v56 = vrot.slane %v1530_v37, %v2577_v7 }
 0x22e   :  { %2098 = vmatpush1.bf16.msra.mxu0 %v2097_v3  ;;  %v887_v3 = vld [vmem:[#allocation8 + $0xf38] sm:$0xff] }
 0x22f   :  { %2226 = vmatpush1.bf16.msra.mxu1 %v2225_v4  ;;  %2100 = vmatprep.subr.bf16.mxu0 %v2099_v5  ;;  %v895_v4 = vld [vmem:[#allocation8 + $0xf78] sm:$0xff]  ;;  %v2117_v5 = vpack.c.bf16 %v876_v62, %v868_v50  ;;  %v932_v50 = vsub.s32 4, %v2554_v48  ;;  %v936_v62 = vsub.s32 5, %v2554_v48 }
 0x230   :  { %2228 = vmatprep.subr.bf16.mxu1 %v2227_v10  ;;  %v892_v10 = vld [vmem:[#allocation8 + $0xf60] sm:$0xff]  ;;  %v2247_v15 = vpack.c.bf16 %v895_v4, %v887_v3 }
 0x232   :  { %2102 = vmatpush1.bf16.msra.mxu0 %v2101_v19  ;;  %v903_v19 = vld [vmem:[#allocation8 + $0xfb8] sm:$0xff] }
 0x233   :  { %2230 = vmatpush1.bf16.msra.mxu1 %v2229_v21  ;;  %2104 = vmatprep.subr.bf16.mxu0 %v2103_v22  ;;  %v911_v21 = vld [vmem:[#allocation8 + $0xff8] sm:$0xff]  ;;  %v2121_v22 = vpack.c.bf16 %v892_v10, %v884_v9  ;;  %v1555_v9 = vrot.slane %v1530_v37, %v936_v62 }
 0x234   :  { %2232 = vmatprep.subr.bf16.mxu1 %v2231_v26  ;;  %v908_v26 = vld [vmem:[#allocation8 + $0xfe0] sm:$0xff]  ;;  %v2251_v27 = vpack.c.bf16 %v911_v21, %v903_v19 }
 0x235   :  { %v2125_v31 = vpack.c.bf16 %v908_v26, %v900_v25 }
 0x236   :  { %2106 = vmatpush1.bf16.msra.mxu0 %v2105_v32  ;;  %v912_v32 = vld [vmem:[#allocation10] sm:$0xff] }
 0x237   :  { %2234 = vmatpush1.bf16.msra.mxu1 %v2233_v35  ;;  %2108 = vmatprep.subr.bf16.mxu0 %v2107_v36  ;;  %v917_v35 = vrot.slane %v912_v32, %v2557_v11  ;;  %v925_v36 = vrot.slane %v912_v32, %v2588_v20  ;;  %v921_v38 = vrot.slane %v912_v32, %v2562_v13 }
 0x238   :  { %2236 = vmatprep.subr.bf16.mxu1 %v2235_v40  ;;  %v929_v39 = vrot.slane %v912_v32, %v2577_v7  ;;  %v933_v20 = vrot.slane %v912_v32, %v932_v50  ;;  %v937_v0 = vrot.slane %v912_v32, %v936_v62  ;;  %v945_v1 = vrot.slane %v912_v32, %v944_v63 }
 0x239   :  { %v1551_v7 = vrot.slane %v1530_v37, %v932_v50 }
 0x23a   :  { %2110 = vmatpush1.bf16.msra.mxu0 %v2109_v46 }
 0x23b   :  { %2238 = vmatpush1.bf16.msra.mxu1 %v2237_v47  ;;  %2112 = vmatprep.subr.bf16.mxu0 %v2111_v49 }
 0x23c   :  { %2240 = vmatprep.subr.bf16.mxu1 %v2239_v53 }
 0x23e   :  { %2114 = vmatpush1.bf16.msra.mxu0 %v2113_v58 }
 0x23f   :  { %2242 = vmatpush1.bf16.msra.mxu1 %v2241_v59  ;;  %2116 = vmatprep.subr.bf16.mxu0 %v2115_v61 }
 0x240   :  { %2244 = vmatprep.subr.bf16.mxu1 %v2243_v34 }
 0x242   :  { %2118 = vmatpush1.bf16.msra.mxu0 %v2117_v5 }
 0x243   :  { %2246 = vmatpush1.bf16.msra.mxu1 %v2245_v6  ;;  %2120 = vmatprep.subr.bf16.mxu0 %v2119_v8 }
 0x244   :  { %2248 = vmatprep.subr.bf16.mxu1 %v2247_v15 }
 0x246   :  { %2122 = vmatpush1.bf16.msra.mxu0 %v2121_v22 }
 0x247   :  { %2250 = vmatpush1.bf16.msra.mxu1 %v2249_v23  ;;  %2124 = vmatprep.subr.bf16.mxu0 %v2123_v24  ;;  %v1563_v23 = vrot.slane %v1530_v37, %v944_v63 }
 0x248   :  { %2252 = vmatprep.subr.bf16.mxu1 %v2251_v27 }
 0x24a   :  { %2126 = vmatpush1.bf16.msra.mxu0 %v2125_v31 }
 0x24b   :  { %2254 = vmatpush1.bf16.msra.mxu1 %v2253_v28 }
 0x24d   :  { %1374 = vmatmul.mubr.f32.vlgmr.msra.gmra.mrb[4].mxu0 %v2593_v60 }
 0x24e   :  { %1516 = vmatmul.mubr.f32.vlgmr.msra.gmra.mrb[4].mxu1 %v2593_v60  ;;  %v1539_v60 = vrot.slane %v1530_v37, %v2562_v13  ;;  %v940_v13 = vsub.s32 6, %v2554_v48 }
 0x250   :  { %v941_v34 = vrot.slane %v912_v32, %v940_v13  ;;  %v1559_v19 = vrot.slane %v1530_v37, %v940_v13 }
 0x2a0   :  { %v1091_v40 = vpop.f32.mrb[2].mxu0  ;;  %v1233_v41 = vpop.f32.mrb[2].mxu1 }
 0x2a1   :  { %v2255_v42 = vadd.f32 %v1091_v40, %v917_v35  ;;  %v2257_v44 = vadd.f32 %v1233_v41, %v925_v36  ;;  %v1093_v45 = vpop.f32.mrb[3].mxu0  ;;  %v1235_v46 = vpop.f32.mrb[3].mxu1 }
 0x2a2   :  { %v2256_v47 = vadd.f32 %v1093_v45, %v921_v38  ;;  %v2258_v49 = vadd.f32 %v1235_v46, %v929_v39 }
 0x2a3   :  { %v1522_v51 = vmax.f32 %v2255_v42, 0.0  ;;  %v1524_v12 = vmax.f32 %v2257_v44, 0.0 }
 0x2a4   :  { %v1523_v53 = vmax.f32 %v2256_v47, 0.0  ;;  %v1525_v55 = vmax.f32 %v2258_v49, 0.0 }
 0x2a5   :  { %v1572_v33 = vmul.f32 %v1535_v43, %v1522_v51  ;;  %v1574_v57 = vmul.f32 %v1543_v52, %v1524_v12 }
 0x2a6   :  { %v1573_v54 = vmul.f32 %v1539_v60, %v1523_v53  ;;  %v1575_v11 = vmul.f32 %v1547_v56, %v1525_v55 }
 0x2a8   :  { %v1580_v58 = vadd.f32 %v1573_v54, %v1572_v33 }
 0x2aa   :  { %v1581_v59 = vadd.f32 %v1580_v58, %v1574_v57 }
 0x2ac   :  { %v1582_v61 = vadd.f32 %v1581_v59, %v1575_v11 }
 0x320   :  { %v1375_v2 = vpop.f32.mrb[4].mxu0 }
 0x321   :  { %v2259_v3 = vadd.f32 %v1375_v2, %v933_v20  ;;  %v1517_v4 = vpop.f32.mrb[4].mxu1  ;;  %v1377_v5 = vpop.f32.mrb[5].mxu0 }
 0x322   :  { %v2261_v6 = vadd.f32 %v1517_v4, %v941_v34  ;;  %v2260_v8 = vadd.f32 %v1377_v5, %v937_v0  ;;  %v1519_v10 = vpop.f32.mrb[5].mxu1 }
 0x323   :  { %v1526_v14 = vmax.f32 %v2259_v3, 0.0  ;;  %v2262_v15 = vadd.f32 %v1519_v10, %v945_v1 }
 0x324   :  { %v1527_v16 = vmax.f32 %v2260_v8, 0.0  ;;  %v1528_v18 = vmax.f32 %v2261_v6, 0.0 }
 0x325   :  { %v1576_v17 = vmul.f32 %v1551_v7, %v1526_v14  ;;  %v1529_v22 = vmax.f32 %v2262_v15, 0.0 }
 0x326   :  { %v1577_v48 = vmul.f32 %v1555_v9, %v1527_v16  ;;  %v1578_v24 = vmul.f32 %v1559_v19, %v1528_v18 }
 0x327   :  { %v1583_v21 = vadd.f32 %v1582_v61, %v1576_v17  ;;  %v1579_v26 = vmul.f32 %v1563_v23, %v1529_v22 }
 0x329   :  { %v1584_v25 = vadd.f32 %v1583_v21, %v1577_v48 }
 0x32b   :  { %v1585_v27 = vadd.f32 %v1584_v25, %v1578_v24 }
 0x32d   :  { %v1586_v29 = vadd.f32 %v1585_v27, %v1579_v26 }
 0x32f   :  { %1587 = vadd.xlane.f32.xlu0 %v1586_v29 }
 0x3bc   :  { %v1588_v31 = vpop.xlane.xlu0 %1587 }
 0x3bd   :  { %v1596_v28 = vadd.f32 %v1613_v30, %v1588_v31 }
 0x3bf   :  { %v1614_v32 = vmul.f32 -1.442695, %v1596_v28 }
 0x3c1   :  { %2281 = vpow2.f32 %v1614_v32 }
 0x3cb   :  { %v2282_v35 = vpop.eup %2281 }
 0x3cc   :  { %v1600_v36 = vadd.f32 1.0, %v2282_v35 }
 0x3ce   :  { %2283 = vrcp.f32 %v1600_v36 }
 0x3d8   :  { %v2284_v38 = vpop.eup %2283 }
 0x3d9   :  { %1604 = vst.msk [vmem:[%s2627_s7] sm:$0xff] %vm1603_vm0, %v2284_v38 }
 0x3da   :  { %1609 = vsyncpa [#allocation4], 1 }
 0x3db   :  { %1610 = vsyncpa [#allocation6], 1 }
 0x3dc   :  { %1611 = vsyncpa [#allocation9], 1 }
 0x3dd   :  { %1612 = vsyncpa [#allocation12], 1 }

</bundles_post_ra>
